<compile_context>
chip_gen: v7x
topology: tpu7x:2x2x1
jax: 0.10.0
libtpu: 0.0.40
codegen_flags: <defaults>
</compile_context>

<pallas_src>
import jax
import jax.numpy as jnp
from jax.experimental import pallas as pl
from jax.experimental.pallas import tpu as pltpu

_SQRT_2_OVER_PI = 0.7978845608028654


def _gelu_tanh(x):
    # GELU with tanh approximation (matches torch.nn.GELU(approximate='tanh')).
    # Keep the math in f32 (EUP tanh, v5e has no bf16 vector path).
    return 0.5 * x * (1.0 + jnp.tanh(_SQRT_2_OVER_PI * (x + 0.044715 * x * x * x)))


def mlp_kernel(x_ref, w1_ref, b1_ref, w2_ref, b2_ref, o_ref, acc_ref):
    # x_ref: (tm, C)      w1_ref: (C, th)   b1_ref: (1, th)
    # w2_ref: (th, C)     b2_ref: (1, C)    o_ref: (tm, C)
    # acc_ref: (tm, C) f32 accumulator, resident across the H (reduction) axis.
    h_idx = pl.program_id(1)

    @pl.when(h_idx == 0)
    def _():
        acc_ref[...] = jnp.zeros_like(acc_ref)

    # c_fc slab: native-dtype MXU matmul, f32 accumulation.
    h = jnp.dot(x_ref[...], w1_ref[...], preferred_element_type=jnp.float32)
    h = h + b1_ref[...].astype(jnp.float32)

    # GELU(tanh) in f32 on VPU/EUP, then back to the MXU-native dtype.
    g = _gelu_tanh(h).astype(w2_ref.dtype)

    # c_proj partial sum for this H slab.
    acc_ref[...] += jnp.dot(g, w2_ref[...], preferred_element_type=jnp.float32)

    @pl.when(h_idx == pl.num_programs(1) - 1)
    def _():
        o_ref[...] = (acc_ref[...] + b2_ref[...].astype(jnp.float32)).astype(o_ref.dtype)


def _pick_hidden_tile(H, preferred):
    """Largest multiple of 128 that divides H, capped at `preferred`."""
    th = min(preferred, H)
    if th == H:
        return H
    th = (th // 128) * 128
    while th > 128 and H % th != 0:
        th -= 128
    if th < 128 or H % th != 0:
        return H
    return th


def mlp_forward(x, w1, b1, w2, b2, *, tm=256, th=1024,
                vmem_limit_bytes=48 * 1024 * 1024):
    """x: (B, T, C); w1: (C, 4C); b1: (4C,); w2: (4C, C); b2: (C,). Returns (B, T, C)."""
    B, T, C = x.shape
    H = w1.shape[1]
    M = B * T

    # Row tile: keep it a multiple of 8 sublanes; shrink for tiny problems.
    if M < tm:
        tm = ((M + 7) // 8) * 8
    M_pad = ((M + tm - 1) // tm) * tm

    # Hidden tile: multiple of 128 lanes that divides H.
    th = _pick_hidden_tile(H, th)

    x2d = x.reshape(M, C)
    if M_pad != M:
        x2d = jnp.pad(x2d, ((0, M_pad - M), (0, 0)))
    b1_2d = b1.reshape(1, H)
    b2_2d = b2.reshape(1, C)

    out2d = pl.pallas_call(
        mlp_kernel,
        out_shape=jax.ShapeDtypeStruct((M_pad, C), x.dtype),
        grid_spec=pltpu.PrefetchScalarGridSpec(
            num_scalar_prefetch=0,
            grid=(M_pad // tm, H // th),           # (rows, hidden-reduction)
            in_specs=[
                pl.BlockSpec((tm, C), lambda i, h: (i, 0)),   # x tile
                pl.BlockSpec((C, th), lambda i, h: (0, h)),   # W1 slab
                pl.BlockSpec((1, th), lambda i, h: (0, h)),   # b1 slab
                pl.BlockSpec((th, C), lambda i, h: (h, 0)),   # W2 slab
                pl.BlockSpec((1, C), lambda i, h: (0, 0)),    # b2
            ],
            out_specs=pl.BlockSpec((tm, C), lambda i, h: (i, 0)),
            scratch_shapes=[pltpu.VMEM((tm, C), jnp.float32)],
        ),
        compiler_params=pltpu.CompilerParams(
            dimension_semantics=("parallel", "arbitrary"),
            vmem_limit_bytes=vmem_limit_bytes,
        ),
    )(x2d, w1, b1_2d, w2, b2_2d)

    if M_pad != M:
        out2d = out2d[:M]
    return out2d.reshape(B, T, C)


def mlp_reference(x, w1, b1, w2, b2):
    h = jnp.dot(x, w1) + b1
    g = _gelu_tanh(h)
    return jnp.dot(g, w2) + b2


if __name__ == "__main__":
    # Small GPT-2-style config kept lane-dense: n_embd=128 (hidden = 4*128 = 512),
    # batch=2, seq=64 -> 128 tokens.
    B, T, C = 2, 64, 128
    H = 4 * C

    key = jax.random.PRNGKey(0)
    kx, k1, k2 = jax.random.split(key, 3)

    x = jax.random.normal(kx, (B, T, C), dtype=jnp.float32)

    # Deterministic GPT-2-style init: normal(0, 0.02) weights, zero biases.
    w1 = (0.02 * jax.random.normal(k1, (C, H))).astype(jnp.float32)   # c_fc weight (in, out)
    b1 = jnp.zeros((H,), dtype=jnp.float32)                           # c_fc bias
    w2 = (0.02 * jax.random.normal(k2, (H, C))).astype(jnp.float32)   # c_proj weight (in, out)
    b2 = jnp.zeros((C,), dtype=jnp.float32)                           # c_proj bias

    # f32 run with an explicit small hidden tile to exercise the H reduction.
    out = mlp_forward(x, w1, b1, w2, b2, tm=128, th=256)
    jax.block_until_ready(out)
    ref = mlp_reference(x, w1, b1, w2, b2)
    assert out.shape == (B, T, C)
    assert jnp.allclose(out, ref, atol=1e-4, rtol=1e-4)

    # bf16 run (MXU-native operands, f32 accumulation) with loose tolerance.
    out_bf16 = mlp_forward(
        x.astype(jnp.bfloat16),
        w1.astype(jnp.bfloat16), b1.astype(jnp.bfloat16),
        w2.astype(jnp.bfloat16), b2.astype(jnp.bfloat16),
    )
    jax.block_until_ready(out_bf16)
    assert out_bf16.shape == (B, T, C)
    assert jnp.allclose(out_bf16.astype(jnp.float32), ref, atol=5e-2, rtol=5e-2)

    print("KERNEL_OK")
</pallas_src>

<mosaic_0001>
module attributes {stable_mosaic.version = 11 : i64} {
  func.func @mlp_kernel(%arg0: i32, %arg1: i32, %arg2: memref<128x128xf32, #tpu.memory_space<vmem>>, %arg3: memref<128x256xf32, #tpu.memory_space<vmem>>, %arg4: memref<1x256xf32, #tpu.memory_space<vmem>>, %arg5: memref<256x128xf32, #tpu.memory_space<vmem>>, %arg6: memref<1x128xf32, #tpu.memory_space<vmem>>, %arg7: memref<128x128xf32, #tpu.memory_space<vmem>>, %arg8: memref<128x128xf32, #tpu.memory_space<vmem>>) attributes {dimension_semantics = [#tpu.dimension_semantics<parallel>, #tpu.dimension_semantics<arbitrary>], iteration_bounds = array<i64: 1, 2>, scalar_prefetch = 0 : i64, scratch_operands = 1 : i64, tpu.core_type = #tpu.core_type<tc>, window_params = [{transform_indices = @transform_0, window_bounds = array<i64: 128, 128>}, {transform_indices = @transform_1, window_bounds = array<i64: 128, 256>}, {transform_indices = @transform_2, window_bounds = array<i64: 1, 256>}, {transform_indices = @transform_3, window_bounds = array<i64: 256, 128>}, {pipeline_mode = #tpu.pipeline_mode<synchronous>, transform_indices = @transform_4, window_bounds = array<i64: 1, 128>}, {transform_indices = @transform_5, window_bounds = array<i64: 128, 128>}]} {
    %c0_i32 = arith.constant 0 : i32
    %0 = arith.cmpi eq, %arg1, %c0_i32 : i32
    %1 = arith.extui %0 : i1 to i32
    %c0_i32_0 = arith.constant 0 : i32
    %2 = arith.cmpi ne, %1, %c0_i32_0 : i32
    scf.if %2 {
      %cst_18 = arith.constant 0.000000e+00 : f32
      %30 = vector.broadcast %cst_18 : f32 to vector<128x128xf32>
      %c0_19 = arith.constant 0 : index
      %c0_20 = arith.constant 0 : index
      %31 = vector.load %arg8[%c0_19, %c0_20] : memref<128x128xf32, #tpu.memory_space<vmem>>, vector<128x128xf32>
      tpu.vector_store %arg8[%c0_19, %c0_20], %30 {strides = array<i32>} : memref<128x128xf32, #tpu.memory_space<vmem>>, vector<128x128xf32>,
    } else {
    }
    %c0 = arith.constant 0 : index
    %c0_1 = arith.constant 0 : index
    %3 = vector.load %arg2[%c0, %c0_1] : memref<128x128xf32, #tpu.memory_space<vmem>>, vector<128x128xf32>
    %c0_2 = arith.constant 0 : index
    %c0_3 = arith.constant 0 : index
    %4 = vector.load %arg3[%c0_2, %c0_3] : memref<128x256xf32, #tpu.memory_space<vmem>>, vector<128x256xf32>
    %cst = arith.constant dense<0.000000e+00> : vector<128x256xf32>
    %5 = tpu.matmul %3, %4, %cst {dimension_numbers = #tpu.dot_dimension_numbers<[1], [0], [0], [1], [0, 0, 1, 1], [], []>} : vector<128x128xf32>, vector<128x256xf32>, vector<128x256xf32> -> vector<128x256xf32>
    %c0_4 = arith.constant 0 : index
    %c0_5 = arith.constant 0 : index
    %6 = vector.load %arg4[%c0_4, %c0_5] : memref<1x256xf32, #tpu.memory_space<vmem>>, vector<1x256xf32>
    %7 = vector.broadcast %6 : vector<1x256xf32> to vector<128x256xf32>
    %8 = arith.addf %5, %7 : vector<128x256xf32>
    %cst_6 = arith.constant 5.000000e-01 : f32
    %9 = vector.broadcast %cst_6 : f32 to vector<128x256xf32>
    %10 = arith.mulf %9, %8 : vector<128x256xf32>
    %cst_7 = arith.constant 4.471500e-02 : f32
    %11 = vector.broadcast %cst_7 : f32 to vector<128x256xf32>
    %12 = arith.mulf %11, %8 : vector<128x256xf32>
    %13 = arith.mulf %12, %8 : vector<128x256xf32>
    %14 = arith.mulf %13, %8 : vector<128x256xf32>
    %15 = arith.addf %8, %14 : vector<128x256xf32>
    %cst_8 = arith.constant 0.797884583 : f32
    %16 = vector.broadcast %cst_8 : f32 to vector<128x256xf32>
    %17 = arith.mulf %16, %15 : vector<128x256xf32>
    %18 = math.tanh %17 : vector<128x256xf32>
    %cst_9 = arith.constant 1.000000e+00 : f32
    %19 = vector.broadcast %cst_9 : f32 to vector<128x256xf32>
    %20 = arith.addf %19, %18 : vector<128x256xf32>
    %21 = arith.mulf %10, %20 : vector<128x256xf32>
    %c0_10 = arith.constant 0 : index
    %c0_11 = arith.constant 0 : index
    %22 = vector.load %arg8[%c0_10, %c0_11] : memref<128x128xf32, #tpu.memory_space<vmem>>, vector<128x128xf32>
    %c0_12 = arith.constant 0 : index
    %c0_13 = arith.constant 0 : index
    %23 = vector.load %arg5[%c0_12, %c0_13] : memref<256x128xf32, #tpu.memory_space<vmem>>, vector<256x128xf32>
    %cst_14 = arith.constant dense<0.000000e+00> : vector<128x128xf32>
    %24 = tpu.matmul %21, %23, %cst_14 {dimension_numbers = #tpu.dot_dimension_numbers<[1], [0], [0], [1], [0, 0, 1, 1], [], []>} : vector<128x256xf32>, vector<256x128xf32>, vector<128x128xf32> -> vector<128x128xf32>
    %25 = arith.addf %22, %24 : vector<128x128xf32>
    %c0_15 = arith.constant 0 : index
    %c0_16 = arith.constant 0 : index
    %26 = vector.load %arg8[%c0_15, %c0_16] : memref<128x128xf32, #tpu.memory_space<vmem>>, vector<128x128xf32>
    tpu.vector_store %arg8[%c0_15, %c0_16], %25 {strides = array<i32>} : memref<128x128xf32, #tpu.memory_space<vmem>>, vector<128x128xf32>,
    %c1_i32 = arith.constant 1 : i32
    %27 = arith.cmpi eq, %arg1, %c1_i32 : i32
    %28 = arith.extui %27 : i1 to i32
    %c0_i32_17 = arith.constant 0 : i32
    %29 = arith.cmpi ne, %28, %c0_i32_17 : i32
    scf.if %29 {
      %c0_18 = arith.constant 0 : index
      %c0_19 = arith.constant 0 : index
      %30 = vector.load %arg8[%c0_18, %c0_19] : memref<128x128xf32, #tpu.memory_space<vmem>>, vector<128x128xf32>
      %c0_20 = arith.constant 0 : index
      %c0_21 = arith.constant 0 : index
      %31 = vector.load %arg6[%c0_20, %c0_21] : memref<1x128xf32, #tpu.memory_space<vmem>>, vector<1x128xf32>
      %32 = vector.broadcast %31 : vector<1x128xf32> to vector<128x128xf32>
      %33 = arith.addf %30, %32 : vector<128x128xf32>
      %c0_22 = arith.constant 0 : index
      %c0_23 = arith.constant 0 : index
      %34 = vector.load %arg7[%c0_22, %c0_23] : memref<128x128xf32, #tpu.memory_space<vmem>>, vector<128x128xf32>
      tpu.vector_store %arg7[%c0_22, %c0_23], %33 {strides = array<i32>} : memref<128x128xf32, #tpu.memory_space<vmem>>, vector<128x128xf32>,
    } else {
    }
    return
  }
  func.func @transform_0(%arg0: i32, %arg1: i32) -> (i32, i32) {
    %c0_i32 = arith.constant 0 : i32
    %c0_i32_0 = arith.constant 0 : i32
    return %arg0, %c0_i32 : i32, i32
  }
  func.func @transform_1(%arg0: i32, %arg1: i32) -> (i32, i32) {
    %c0_i32 = arith.constant 0 : i32
    %c0_i32_0 = arith.constant 0 : i32
    return %c0_i32, %arg1 : i32, i32
  }
  func.func @transform_2(%arg0: i32, %arg1: i32) -> (i32, i32) {
    %c0_i32 = arith.constant 0 : i32
    %c0_i32_0 = arith.constant 0 : i32
    return %c0_i32, %arg1 : i32, i32
  }
  func.func @transform_3(%arg0: i32, %arg1: i32) -> (i32, i32) {
    %c0_i32 = arith.constant 0 : i32
    %c0_i32_0 = arith.constant 0 : i32
    return %arg1, %c0_i32 : i32, i32
  }
  func.func @transform_4(%arg0: i32, %arg1: i32) -> (i32, i32) {
    %c0_i32 = arith.constant 0 : i32
    %c0_i32_0 = arith.constant 0 : i32
    %c0_i32_1 = arith.constant 0 : i32
    return %c0_i32, %c0_i32_0 : i32, i32
  }
  func.func @transform_5(%arg0: i32, %arg1: i32) -> (i32, i32) {
    %c0_i32 = arith.constant 0 : i32
    %c0_i32_0 = arith.constant 0 : i32
    return %arg0, %c0_i32 : i32, i32
  }
}

</mosaic_0001>

<bundles_post_ra>
// kernel: tpu_custom_call.1
= control target key start
LH: loop header
LB: loop body
LE: loop exit
PB: predicated region body
PF: predicated region fallthrough
CT: control target
= control target key end

     0   :  { %s2384_s0 = inlined_call_operand.hbm [shape: f32[128,128], index: 0, kind: input, shape index: {}]   ;;  %s2385_s1 = inlined_call_operand.hbm [shape: f32[128,512], index: 1, kind: input, shape index: {}]   ;;  %s2386_s2 = inlined_call_operand.vmem [shape: f32[1,512], index: 2, kind: input, shape index: {}]   ;;  %s2387_s3 = inlined_call_operand.hbm [shape: f32[512,128], index: 3, kind: input, shape index: {}]   ;;  %s2388_s4 = inlined_call_operand.vmem [shape: f32[1,128], index: 4, kind: input, shape index: {}]   ;;  %s2389_s5 = inlined_call_operand.hbm [shape: f32[128,128], index: 5, kind: output, shape index: {}]  }
   0x1   :  { %2396 = sst [smem:[#allocation13_spill]] %s2385_s1 }
   0x2   :  { %10 = vsyncpa [#allocation4], 0 }
   0x3   :  { %11 = vsyncpa [#allocation7], 0 }
   0x4   :  { %13 = vsyncpa [#allocation7 + $0x1], 0 }
   0x5   :  { %14 = vsyncpa [#allocation5], 0  ;;  %s1796_s18 = smov 0   ;;  %s1798_s19 = smov 0  }
   0x6   :  { %s1800_s20 = smov 0   ;;  %s1802_s21 = smov 0  }
   0x7   :  { %s1804_s22 = smov 0   ;;  %s1806_s23 = smov 0  }
   0x8 LB: > { %s29_s24 = sadd.s32 1, %s1747_s22  ;;  %s65_s25 = sadd.s32 1, %s1739_s20  ;;  %s1751_s23 = sphi %s1806_s23, %s20_s23   ;;  %s1747_s22 = sphi %s1804_s22, %s2413_s22   ;;  %s1743_s21 = sphi %s1802_s21, %s2412_s21   ;;  %s1739_s20 = sphi %s1800_s20, %s2411_s20   ;;  %s1735_s19 = sphi %s1798_s19, %s2410_s19   ;;  %s1731_s18 = sphi %s1796_s18, %s2409_s18  }
   0x9   : > { %p30_p0 = scmp.ge.s32.totalorder %s29_s24, 2  ;;  %p72_p1 = scmp.ne.s32.totalorder %s1739_s20, %s1735_s19 }
   0xa   : > { %p73_p2 = scmp.eq.s32.totalorder %s1751_s23, 0  ;;  %p1452_p4 = scmp.lt.s32.totalorder %s1751_s23, 2 }
   0xb   : > { %s2415_s24 = smov (%p30_p0, %s29_s24), 0  ;;  %s220_s27 = sand.u32 1, %s1751_s23  }
   0xc   : > { %p74_p3 = por %p73_p2, %p72_p1  ;;  %s62_s26 = ssub.s32 %s1747_s22, %s2415_s24 }
   0xd   : > { %p63_p5 = scmp.eq.s32.totalorder %s62_s26, 0  ;;  %s222_s28 = sand.u32 1, %s1739_s20  }
   0xe   : > { %s1282_s29 = sshll.u32 %s1747_s22, 8  ;;  %s1842_s6 = sshll.u32 %s222_s28, 8 }
   0xf   : > { %s1840_s30 = scalar_select %p63_p5, %s1739_s20, %s65_s25  }
  0x10   : > { %s2397_s1 = sld [smem:[#allocation13_spill]]  ;;  %p1849_p6 = pnand %p1452_p4, %p74_p3 }
  0x11   : > { %s224_s11 = scalar_lea.vmem [#allocation6], %s1842_s6  ;;  %s1856_s13 = scalar_lea.sflag [#allocation7], %s220_s27 }
  0x12   : > { %s2398_s10 = scalar_select %p1849_p6, 1, 0 }
  0x13   : > { %s231_s12 = sshll.u32 %s224_s11, 4  ;;  %p2391_p8 = pneg %p1849_p6  ;;  %s1854_s12 = int_to_ptr.vmem [resolvable:$true] %s231_s12 }
  0x16   : > { %s1847_s9 = scalar_lea.hbm %s2397_s1, %s1282_s29  ;;  %s1584_s17 = scalar_lea.hbm %s2397_s1, 8192 }
  0x17   : > { %s1579_s14 = scalar_lea.hbm %s1847_s9, 4096  ;;  %p1585_p11 = scmp.lt.u32.totalorder %s1847_s9, %s2397_s1 }
  0x18   : > { %p1580_p7 = scmp.ne.s32.totalorder %s1847_s9, %s1579_s14  ;;  %p1586_p12 = scmp.lt.u32.totalorder %s1584_s17, %s1579_s14 }
  0x19   : > { %p1588_p0 = scmp.lt.u32.totalorder %s1579_s14, %s1847_s9 }
  0x1a   : > { %p1582_p9 = pnand %p2391_p8, %p1580_p7  ;;  %p1587_p13 = por %p1586_p12, %p1585_p11 }
  0x1c   : > { %p1583_p10 = pneg %p1582_p9  ;;  %p1589_p1 = por %p1588_p0, %p1587_p13 }
  0x1e   : > { %p1590_p2 = pnand %p1589_p1, %p1583_p10 }
  0x20   : > { %1593 = shalt.err (!%p1590_p2)
}
  0x21   : > { %s1594_s27 = scalar_lea.vmem %s1854_s12, 4096  ;;  %s1753_s28 = smov [#allocation6]  }
  0x22   : > { %p1595_p3 = scmp.ne.s32.totalorder %s1854_s12, %s1594_s27  ;;  %s1599_s29 = sshll.u32 %s1753_s28, 4  ;;  %s1600_s29 = int_to_ptr.vmem [resolvable:$false] %s1599_s29 }
  0x23   : > { %s1601_s7 = scalar_lea.vmem %s1600_s29, 8192  ;;  %p1602_p7 = scmp.lt.s32.totalorder %s1854_s12, %s1600_s29 }
  0x24   : > { %p1597_p4 = pnand %p1595_p3, %p2391_p8  ;;  %p1603_p9 = scmp.lt.s32.totalorder %s1601_s7, %s1594_s27 }
  0x26   : > { %p1598_p5 = pneg %p1597_p4  ;;  %p1604_p11 = por %p1603_p9, %p1602_p7 }
  0x28   : > { %p1605_p12 = pnand %p1604_p11, %p1598_p5 }
  0x2a   : > { %1608 = shalt.err (!%p1605_p12)
}
  0x2b   : > { %s1754_s8 = smov 512   ;;  %s1755_s11 = smov 256  }
  0x2c   : > { %s1756_s14 = smov 16   ;;  %s1885_s15 = sadd.s32 4294967295, %s1751_s23  }
  0x2d   : > { %1447 = dma.hbm_to_vmem [thread:$0]  (!%p1849_p6), %s1847_s9, 4096, %s1854_s12, %s1856_s13, %s1754_s8, %s1755_s11, %s1756_s14  }
  0x2e   : > { %p78_p10 = scmp.ne.s32.totalorder %s1735_s19, %s1731_s18  ;;  %p2390_p13 = scmp.eq.s32.totalorder %s1885_s15, 0 }
  0x2f   : > { %p1261_p0 = scmp.ge.s32.totalorder %s1751_s23, 1  ;;  %p188_p1 = scmp.lt.s32.totalorder %s1751_s23, 3 }
  0x30   : > { %p1894_p2 = por %p2390_p13, %p78_p10  ;;  %s1757_s9 = smov [#allocation3]  }
  0x31   : > { %p1898_p3 = pnand %p1261_p0, %p188_p1  ;;  %s203_s12 = sshll.u32 %s1757_s9, 4  ;;  %s1902_s12 = int_to_ptr.vmem [resolvable:$true] %s203_s12 }
  0x32   : > { %s2399_s16 = scalar_select %p1894_p2, 1, 0 }
  0x33   : > { %s2400_s17 = scalar_select %p1898_p3, 1, 0 }
  0x34   : > { %p1440_p4 = pneg %p1898_p3  ;;  %s1283_s18 = sshll.u32 %s1747_s22, 12 }
  0x35   : > { %s1916_s28 = scalar_lea.hbm %s2387_s3, %s1283_s18  ;;  %s253_s29 = scalar_lea.vmem [#allocation8], %s1842_s6 }
  0x36   : > { %p1909_p5 = pnand %p1440_p4, %p2390_p13  ;;  %s260_s7 = sshll.u32 %s253_s29, 4  ;;  %s1919_s7 = int_to_ptr.vmem [resolvable:$true] %s260_s7 }
  0x37   : > { %s1609_s14 = scalar_lea.hbm %s2384_s0, 2048 }
  0x38   : > { %p1610_p7 = scmp.ne.s32.totalorder %s2384_s0, %s1609_s14  ;;  %p1611_p9 = pneg %p1909_p5 }
  0x39   : > { %p1616_p10 = scmp.lt.u32.totalorder %s1609_s14, %s2384_s0 }
  0x3a   : > { %p1612_p11 = pnand %p1611_p9, %p1610_p7 }
  0x3c   : > { %p1613_p12 = pneg %p1612_p11 }
  0x3e   : > { %p1618_p0 = pnand %p1616_p10, %p1613_p12 }
  0x40   : > { %1621 = shalt.err (!%p1618_p0)
}
  0x41   : > { %s1622_s6 = scalar_lea.vmem %s1902_s12, 2048  ;;  %p1630_p8 = scmp.lt.s32.totalorder %s1902_s12, %s1902_s12 }
  0x42   : > { %p1623_p1 = scmp.ne.s32.totalorder %s1902_s12, %s1622_s6  ;;  %p1631_p2 = scmp.lt.s32.totalorder %s1622_s6, %s1622_s6 }
  0x44   : > { %p1625_p4 = pnand %p1623_p1, %p1611_p9  ;;  %p1632_p3 = por %p1631_p2, %p1630_p8 }
  0x46   : > { %p1626_p13 = pneg %p1625_p4 }
  0x48   : > { %p1633_p6 = pnand %p1632_p3, %p1626_p13 }
  0x4a   : > { %1636 = shalt.err (!%p1633_p6)
}
  0x4b   : > { %s1758_s1 = smov 128   ;;  %s1759_s18 = smov 8  }
  0x4c   : > { %1443 = dma.hbm_to_vmem [thread:$0]  (!%p1909_p5), %s2384_s0, 2048, %s1902_s12, [#allocation4], %s1758_s1, %s1758_s1, %s1759_s18  }
  0x4d   : > { %s1637_s11 = scalar_lea.hbm %s1916_s28, 4096  ;;  %p2402_p6 = scmp.ne.s32.totalorder %s2398_s10, 0 }
  0x4e   : > { %p1638_p8 = scmp.ne.s32.totalorder %s1916_s28, %s1637_s11  ;;  %s1642_s26 = scalar_lea.hbm %s2387_s3, 8192 }
  0x4f   : > { %p2403_p13 = pneg %p2402_p6  ;;  %p1643_p7 = scmp.lt.u32.totalorder %s1916_s28, %s2387_s3 }
  0x50   : > { %p1644_p9 = scmp.lt.u32.totalorder %s1642_s26, %s1637_s11  ;;  %p1646_p12 = scmp.lt.u32.totalorder %s1637_s11, %s1916_s28 }
  0x51   : > { %p1640_p2 = pnand %p1638_p8, %p2403_p13 }
  0x52   : > { %p1645_p11 = por %p1644_p9, %p1643_p7 }
  0x53   : > { %p1641_p3 = pneg %p1640_p2 }
  0x54   : > { %p1647_p10 = por %p1646_p12, %p1645_p11 }
  0x56   : > { %p1648_p0 = pnand %p1647_p10, %p1641_p3 }
  0x58   : > { %1651 = shalt.err (!%p1648_p0)
}
  0x59   : > { %s1652_s12 = scalar_lea.vmem %s1919_s7, 4096  ;;  %p2404_p1 = pmov %p2403_p13 }
  0x5a   : > { %p1653_p5 = scmp.ne.s32.totalorder %s1919_s7, %s1652_s12  ;;  %s1760_s25 = smov [#allocation8]  }
  0x5b   : > { %s1657_s29 = sshll.u32 %s1760_s25, 4  ;;  %s1658_s29 = int_to_ptr.vmem [resolvable:$false] %s1657_s29 }
  0x5c   : > { %p1655_p4 = pnand %p1653_p5, %p2404_p1  ;;  %s1659_s8 = scalar_lea.vmem %s1658_s29, 8192 }
  0x5d   : > { %p1660_p13 = scmp.lt.s32.totalorder %s1919_s7, %s1658_s29  ;;  %p1661_p2 = scmp.lt.s32.totalorder %s1659_s8, %s1652_s12 }
  0x5e   : > { %p1656_p8 = pneg %p1655_p4 }
  0x5f   : > { %p1662_p7 = por %p1661_p2, %p1660_p13 }
  0x61   : > { %p1663_p9 = pnand %p1662_p7, %p1656_p8 }
  0x63   : > { %1666 = shalt.err (!%p1663_p9)
}
  0x64   : > { %1450 = dma.hbm_to_vmem [thread:$0]  (!%p2402_p6), %s1916_s28, 4096, %s1919_s7, %s1856_s13, %s1758_s1, %s1758_s1, %s1759_s18  }
  0x65   : > { %p2405_p3 = scmp.ne.s32.totalorder %s2400_s17, 0 }
  0x66   : > { %p2406_p11 = scmp.eq.s32.totalorder (!%p2405_p3), %s1885_s15, 0 }
  0x67   : > { %272 = sbr.rel (%p2405_p3) target bundleno = 728 (0x2d8), region = 40 }
  0x6e   : > { %1718 = dma.done.wait (%p2406_p11), [#allocation4], 2048   ;;  %p2407_p12 = pmov %p2406_p11 }
  0x6f   : > { %s278_s10 = sand.u32 1, %s1885_s15   ;;  %s280_s11 = sand.u32 1, %s1735_s19  }
  0x70   : > { %1720 = vsyncadd (%p2407_p12), [#allocation4], 4294965248  ;;  %s1272_s14 = sshll.u32 %s280_s11, 8  ;;  %s279_s9 = scalar_lea.sflag [#allocation7], %s278_s10 }
  0x71   : > { %s1980_s26 = scalar_lea.vmem [#allocation6], %s1272_s14  ;;  %p2408_p10 = scmp.ne.s32.totalorder %s2399_s16, 0 }
  0x73   : > { %1722 = dma.done.wait (%p2408_p10), %s279_s9, 8192  }
  0x74   : > { %1724 = vsyncadd (%p2408_p10), %s279_s9, 4294959104  ;;  %s1274_s13 = sshll.u32 %s1743_s21, 1  ;;  %s1993_s1 = scalar_lea.vmem [#allocation8], %s1272_s14 }
  0x75   : > { %p325_p6 = scmp.lt.s32.totalorder %s1274_s13, 3  ;;  %p1275_p0 = scmp.ne.s32.totalorder %s1743_s21, 0 }
  0x76   : > { %v1761_v0 = vmov (!%p1275_p0), 0.0  }
  0x77   : > { %s2417_s13 = smov (!%p325_p6, %s1274_s13), 3  ;;  %334 = sbr.rel (%p1275_p0) target bundleno = 128 (0x80), region = 56 }
  0x78   : > { %s327_s7 = scalar_lea.vmem %s2386_s2, %s2417_s13  ;;  %335 = vst [vmem:[#allocation2] sm:$0xff] (!%p1275_p0), %v1761_v0  ;;  %336 = vst [vmem:[#allocation2 + $0x8] sm:$0xff] (!%p1275_p0), %v1761_v0 }
  0x79   : > { %337 = vst [vmem:[#allocation2 + $0x10] sm:$0xff] (!%p1275_p0), %v1761_v0  ;;  %338 = vst [vmem:[#allocation2 + $0x18] sm:$0xff] (!%p1275_p0), %v1761_v0 }
  0x7a   : > { %339 = vst [vmem:[#allocation2 + $0x20] sm:$0xff] (!%p1275_p0), %v1761_v0  ;;  %340 = vst [vmem:[#allocation2 + $0x28] sm:$0xff] (!%p1275_p0), %v1761_v0 }
  0x7b   : > { %341 = vst [vmem:[#allocation2 + $0x30] sm:$0xff] (!%p1275_p0), %v1761_v0  ;;  %342 = vst [vmem:[#allocation2 + $0x38] sm:$0xff] (!%p1275_p0), %v1761_v0 }
  0x7c   : > { %343 = vst [vmem:[#allocation2 + $0x40] sm:$0xff] (!%p1275_p0), %v1761_v0  ;;  %344 = vst [vmem:[#allocation2 + $0x48] sm:$0xff] (!%p1275_p0), %v1761_v0 }
  0x7d   : > { %345 = vst [vmem:[#allocation2 + $0x50] sm:$0xff] (!%p1275_p0), %v1761_v0  ;;  %346 = vst [vmem:[#allocation2 + $0x58] sm:$0xff] (!%p1275_p0), %v1761_v0 }
  0x7e   : > { %347 = vst [vmem:[#allocation2 + $0x60] sm:$0xff] %v1761_v0  ;;  %348 = vst [vmem:[#allocation2 + $0x68] sm:$0xff] %v1761_v0 }
  0x7f   : > { %349 = vst [vmem:[#allocation2 + $0x70] sm:$0xff] %v1761_v0  ;;  %350 = vst [vmem:[#allocation2 + $0x78] sm:$0xff] %v1761_v0 }
  0x80 PF: > { %v368_v1 = vld [vmem:[%s1980_s26 + $0x8] sm:$0xff]  ;;  %v370_v2 = vld [vmem:[%s1980_s26 + $0x18] sm:$0xff]  ;;  %v367_v3 = vld [vmem:[%s1980_s26] sm:$0xff]  ;;  %v1762_v8 = vmov 0.0   ;;  %p1276_p5 = scmp.ne.s32.totalorder %s1743_s21, 1 }
  0x81   : > { %v1364_v4 = vpack.c.bf16 %v370_v2, %v368_v1  ;;  %v369_v5 = vld [vmem:[%s1980_s26 + $0x10] sm:$0xff]  ;;  %v372_v6 = vld [vmem:[%s1980_s26 + $0x28] sm:$0xff]  ;;  %v374_v7 = vld [vmem:[%s1980_s26 + $0x38] sm:$0xff]  ;;  %475 = vmatprep.mubr.f32.mxu0 %v1762_v8 }
  0x82   : > { %v1366_v9 = vpack.c.bf16 %v369_v5, %v367_v3  ;;  %v1368_v10 = vpack.c.bf16 %v374_v7, %v372_v6  ;;  %v371_v11 = vld [vmem:[%s1980_s26 + $0x20] sm:$0xff]  ;;  %v373_v12 = vld [vmem:[%s1980_s26 + $0x30] sm:$0xff]  ;;  %v376_v13 = vld [vmem:[%s1980_s26 + $0x48] sm:$0xff] }
  0x83   : > { %1365 = vmatprep.subr.bf16.mxu0 %v1364_v4  ;;  %v378_v14 = vld [vmem:[%s1980_s26 + $0x58] sm:$0xff]  ;;  %v1370_v15 = vpack.c.bf16 %v373_v12, %v371_v11  ;;  %v375_v17 = vld [vmem:[%s1980_s26 + $0x40] sm:$0xff]  ;;  %v377_v18 = vld [vmem:[%s1980_s26 + $0x50] sm:$0xff] }
  0x84   : > { %1367 = vmatpush1.bf16.msra.mxu0 %v1366_v9  ;;  %v1372_v16 = vpack.c.bf16 %v378_v14, %v376_v13  ;;  %v380_v19 = vld [vmem:[%s1980_s26 + $0x68] sm:$0xff]  ;;  %v382_v20 = vld [vmem:[%s1980_s26 + $0x78] sm:$0xff]  ;;  %v1374_v21 = vpack.c.bf16 %v377_v18, %v375_v17  ;;  %v379_v23 = vld [vmem:[%s1980_s26 + $0x60] sm:$0xff] }
  0x85   : > { %1369 = vmatprep.subr.bf16.mxu0 %v1368_v10  ;;  %v1376_v22 = vpack.c.bf16 %v382_v20, %v380_v19  ;;  %v381_v24 = vld [vmem:[%s1980_s26 + $0x70] sm:$0xff]  ;;  %v384_v25 = vld [vmem:[%s1980_s26 + $0x88] sm:$0xff]  ;;  %v386_v26 = vld [vmem:[%s1980_s26 + $0x98] sm:$0xff] }
  0x86   : > { %v1378_v27 = vpack.c.bf16 %v381_v24, %v379_v23  ;;  %v1380_v28 = vpack.c.bf16 %v386_v26, %v384_v25  ;;  %v383_v29 = vld [vmem:[%s1980_s26 + $0x80] sm:$0xff]  ;;  %v385_v30 = vld [vmem:[%s1980_s26 + $0x90] sm:$0xff]  ;;  %v388_v31 = vld [vmem:[%s1980_s26 + $0xa8] sm:$0xff] }
  0x87   : > { %v390_v32 = vld [vmem:[%s1980_s26 + $0xb8] sm:$0xff]  ;;  %v1382_v33 = vpack.c.bf16 %v385_v30, %v383_v29  ;;  %v892_v34 = vld [vmem:[%s1993_s1 + $0x80] sm:$0xff]  ;;  %v893_v35 = vld [vmem:[%s1993_s1 + $0x88] sm:$0xff] }
  0x88   : > { %1371 = vmatpush1.bf16.msra.mxu0 %v1370_v15  ;;  %v876_v36 = vld [vmem:[%s1993_s1] sm:$0xff]  ;;  %v1384_v37 = vpack.c.bf16 %v390_v32, %v388_v31  ;;  %v389_v39 = vld [vmem:[%s1980_s26 + $0xb0] sm:$0xff]  ;;  %v1396_v40 = vpack.c.bf16 %v893_v35, %v892_v34  ;;  %v877_v41 = vld [vmem:[%s1993_s1 + $0x8] sm:$0xff] }
  0x89   : > { %1373 = vmatprep.subr.bf16.mxu0 %v1372_v16  ;;  %v387_v38 = vld [vmem:[%s1980_s26 + $0xa0] sm:$0xff]  ;;  %v392_v42 = vld [vmem:[%s1980_s26 + $0xc8] sm:$0xff]  ;;  %v394_v43 = vld [vmem:[%s1980_s26 + $0xd8] sm:$0xff]  ;;  %v1398_v44 = vpack.c.bf16 %v877_v41, %v876_v36 }
  0x8a   : > { %1397 = vmatprep.subr.bf16.mxu1 %v1396_v40  ;;  %v1386_v45 = vpack.c.bf16 %v389_v39, %v387_v38  ;;  %v1388_v46 = vpack.c.bf16 %v394_v43, %v392_v42  ;;  %v391_v47 = vld [vmem:[%s1980_s26 + $0xc0] sm:$0xff]  ;;  %v393_v48 = vld [vmem:[%s1980_s26 + $0xd0] sm:$0xff]  ;;  %v396_v49 = vld [vmem:[%s1980_s26 + $0xe8] sm:$0xff] }
  0x8b   : > { %1399 = vmatpush3.bf16.msra.mxu1 %v1398_v44  ;;  %v398_v50 = vld [vmem:[%s1980_s26 + $0xf8] sm:$0xff]  ;;  %v1390_v51 = vpack.c.bf16 %v393_v48, %v391_v47  ;;  %v395_v53 = vld [vmem:[%s1980_s26 + $0xe0] sm:$0xff]  ;;  %v397_v54 = vld [vmem:[%s1980_s26 + $0xf0] sm:$0xff] }
  0x8c   : > { %1375 = vmatpush1.bf16.msra.mxu0 %v1374_v21  ;;  %v1392_v52 = vpack.c.bf16 %v398_v50, %v396_v49  ;;  %v1394_v55 = vpack.c.bf16 %v397_v54, %v395_v53  ;;  %v351_v56 = vld [vmem:[#allocation3] sm:$0xff]  ;;  %v352_v57 = vld [vmem:[#allocation3 + $0x8] sm:$0xff]  ;;  %v353_v58 = vld [vmem:[#allocation3 + $0x10] sm:$0xff]  ;;  %v401_v50 = vlaneseq }
  0x8d   : > { %1377 = vmatprep.subr.bf16.mxu0 %v1376_v22  ;;  %v354_v59 = vld [vmem:[#allocation3 + $0x18] sm:$0xff]  ;;  %v355_v60 = vld [vmem:[#allocation3 + $0x20] sm:$0xff]  ;;  %v356_v61 = vld [vmem:[#allocation3 + $0x28] sm:$0xff] }
  0x8e   : > { %v357_v62 = vld [vmem:[#allocation3 + $0x30] sm:$0xff]  ;;  %v358_v63 = vld [vmem:[#allocation3 + $0x38] sm:$0xff]  ;;  %v359_v0 = vld [vmem:[#allocation3 + $0x40] sm:$0xff] }
  0x8f   : > { %v360_v1 = vld [vmem:[#allocation3 + $0x48] sm:$0xff]  ;;  %v361_v2 = vld [vmem:[#allocation3 + $0x50] sm:$0xff]  ;;  %v362_v3 = vld [vmem:[#allocation3 + $0x58] sm:$0xff] }
  0x90   : > { %1379 = vmatpush1.bf16.msra.mxu0 %v1378_v27  ;;  %v363_v4 = vld [vmem:[#allocation3 + $0x60] sm:$0xff]  ;;  %v364_v5 = vld [vmem:[#allocation3 + $0x68] sm:$0xff]  ;;  %v365_v6 = vld [vmem:[#allocation3 + $0x70] sm:$0xff] }
  0x91   : > { %1381 = vmatprep.subr.bf16.mxu0 %v1380_v28  ;;  %v366_v7 = vld [vmem:[#allocation3 + $0x78] sm:$0xff]  ;;  %v894_v9 = vld [vmem:[%s1993_s1 + $0x90] sm:$0xff]  ;;  %v896_v15 = vld [vmem:[%s1993_s1 + $0xa0] sm:$0xff] }
  0x92   : > { %v895_v10 = vld [vmem:[%s1993_s1 + $0x98] sm:$0xff]  ;;  %v878_v12 = vld [vmem:[%s1993_s1 + $0x10] sm:$0xff]  ;;  %v897_v16 = vld [vmem:[%s1993_s1 + $0xa8] sm:$0xff] }
  0x93   : > { %v1400_v11 = vpack.c.bf16 %v895_v10, %v894_v9  ;;  %v879_v13 = vld [vmem:[%s1993_s1 + $0x18] sm:$0xff]  ;;  %v1404_v17 = vpack.c.bf16 %v897_v16, %v896_v15  ;;  %v881_v18 = vld [vmem:[%s1993_s1 + $0x28] sm:$0xff]  ;;  %v898_v20 = vld [vmem:[%s1993_s1 + $0xb0] sm:$0xff] }
  0x94   : > { %1383 = vmatpush1.bf16.msra.mxu0 %v1382_v33  ;;  %v1402_v14 = vpack.c.bf16 %v879_v13, %v878_v12  ;;  %v899_v21 = vld [vmem:[%s1993_s1 + $0xb8] sm:$0xff]  ;;  %v882_v23 = vld [vmem:[%s1993_s1 + $0x30] sm:$0xff]  ;;  %v900_v26 = vld [vmem:[%s1993_s1 + $0xc0] sm:$0xff] }
  0x95   : > { %1385 = vmatprep.subr.bf16.mxu0 %v1384_v37  ;;  %1401 = vmatprep.subr.bf16.mxu1 %v1400_v11  ;;  %v1408_v22 = vpack.c.bf16 %v899_v21, %v898_v20  ;;  %v883_v24 = vld [vmem:[%s1993_s1 + $0x38] sm:$0xff]  ;;  %v901_v27 = vld [vmem:[%s1993_s1 + $0xc8] sm:$0xff]  ;;  %v884_v29 = vld [vmem:[%s1993_s1 + $0x40] sm:$0xff] }
  0x96   : > { %1403 = vmatpush3.bf16.msra.mxu1 %v1402_v14  ;;  %v1410_v25 = vpack.c.bf16 %v883_v24, %v882_v23  ;;  %v1412_v28 = vpack.c.bf16 %v901_v27, %v900_v26  ;;  %v885_v30 = vld [vmem:[%s1993_s1 + $0x48] sm:$0xff]  ;;  %v902_v32 = vld [vmem:[%s1993_s1 + $0xd0] sm:$0xff]  ;;  %v903_v33 = vld [vmem:[%s1993_s1 + $0xd8] sm:$0xff] }
  0x97   : > { %1405 = vmatprep.subr.bf16.mxu1 %v1404_v17  ;;  %v1414_v31 = vpack.c.bf16 %v885_v30, %v884_v29  ;;  %v1416_v34 = vpack.c.bf16 %v903_v33, %v902_v32  ;;  %v886_v35 = vld [vmem:[%s1993_s1 + $0x50] sm:$0xff]  ;;  %v887_v36 = vld [vmem:[%s1993_s1 + $0x58] sm:$0xff]  ;;  %v904_v38 = vld [vmem:[%s1993_s1 + $0xe0] sm:$0xff] }
  0x98   : > { %1387 = vmatpush1.bf16.msra.mxu0 %v1386_v45  ;;  %v1418_v37 = vpack.c.bf16 %v887_v36, %v886_v35  ;;  %v905_v39 = vld [vmem:[%s1993_s1 + $0xe8] sm:$0xff]  ;;  %v888_v41 = vld [vmem:[%s1993_s1 + $0x60] sm:$0xff]  ;;  %v906_v44 = vld [vmem:[%s1993_s1 + $0xf0] sm:$0xff] }
  0x99   : > { %1389 = vmatprep.subr.bf16.mxu0 %v1388_v46  ;;  %v1420_v40 = vpack.c.bf16 %v905_v39, %v904_v38  ;;  %v889_v42 = vld [vmem:[%s1993_s1 + $0x68] sm:$0xff]  ;;  %v907_v45 = vld [vmem:[%s1993_s1 + $0xf8] sm:$0xff]  ;;  %v890_v47 = vld [vmem:[%s1993_s1 + $0x70] sm:$0xff] }
  0x9a   : > { %v1422_v43 = vpack.c.bf16 %v889_v42, %v888_v41  ;;  %v1424_v46 = vpack.c.bf16 %v907_v45, %v906_v44  ;;  %v891_v48 = vld [vmem:[%s1993_s1 + $0x78] sm:$0xff]  ;;  %v399_v53 = vld [vmem:[%s327_s7] sm:$0x3] }
  0x9b   : > { %v1426_v49 = vpack.c.bf16 %v891_v48, %v890_v47 }
  0x9c   : > { %1391 = vmatpush1.bf16.msra.mxu0 %v1390_v51  ;;  %v402_v51 = vshrl.u32 %v401_v50, 7 }
  0x9d   : > { %1393 = vmatprep.subr.bf16.mxu0 %v1392_v52 }
  0x9e   : > { %v403_v52 = vsub.s32 0, %v402_v51  ;;  %v407_v54 = vsub.s32 1, %v402_v51 }
  0xa0   : > { %1395 = vmatpush1.bf16.msra.mxu0 %v1394_v55  ;;  %v2081_v55 = vrot.slane %v399_v53, %v403_v52 }
  0xa3   : > { %476 = vmatmul.mubr.f32.vlgmr.msra.gmra.mrb[0].mxu0 %v351_v56  ;;  %v2083_v56 = vrot.slane %v399_v53, %v407_v54 }
  0xa4   : > { %481 = vmatprep.mubr.f32.mxu0 %v1762_v8 }
  0xa7   : > { %482 = vmatmul.mubr.f32.gmra.mrb[2].mxu0 %v352_v57 }
  0xa8   : > { %487 = vmatprep.mubr.f32.mxu0 %v1762_v8 }
  0xab   : > { %488 = vmatmul.mubr.f32.gmra.mrb[4].mxu0 %v353_v58 }
  0xac   : > { %493 = vmatprep.mubr.f32.mxu0 %v1762_v8 }
  0xaf   : > { %494 = vmatmul.mubr.f32.gmra.mrb[6].mxu0 %v354_v59 }
  0xb0   : > { %499 = vmatprep.mubr.f32.mxu0 %v1762_v8 }
  0xb3   : > { %500 = vmatmul.mubr.f32.gmra.mrb[8].mxu0 %v355_v60 }
  0xb4   : > { %505 = vmatprep.mubr.f32.mxu0 %v1762_v8 }
  0xb7   : > { %506 = vmatmul.mubr.f32.gmra.mrb[10].mxu0 %v356_v61 }
  0xb8   : > { %511 = vmatprep.mubr.f32.mxu0 %v1762_v8 }
  0xbb   : > { %512 = vmatmul.mubr.f32.gmra.mrb[12].mxu0 %v357_v62 }
  0xbc   : > { %517 = vmatprep.mubr.f32.mxu0 %v1762_v8 }
  0xbf   : > { %518 = vmatmul.mubr.f32.gmra.mrb[14].mxu0 %v358_v63 }
  0xc0   : > { %523 = vmatprep.mubr.f32.mxu0 %v1762_v8 }
  0xc3   : > { %524 = vmatmul.mubr.f32.gmra.mrb[16].mxu0 %v359_v0 }
  0xc4   : > { %529 = vmatprep.mubr.f32.mxu0 %v1762_v8 }
  0xc7   : > { %530 = vmatmul.mubr.f32.gmra.mrb[18].mxu0 %v360_v1 }
  0xc8   : > { %535 = vmatprep.mubr.f32.mxu0 %v1762_v8 }
  0xcb   : > { %536 = vmatmul.mubr.f32.gmra.mrb[20].mxu0 %v361_v2 }
  0xcc   : > { %541 = vmatprep.mubr.f32.mxu0 %v1762_v8 }
  0xcf   : > { %542 = vmatmul.mubr.f32.gmra.mrb[22].mxu0 %v362_v3 }
  0xd0   : > { %547 = vmatprep.mubr.f32.mxu0 %v1762_v8 }
  0xd3   : > { %548 = vmatmul.mubr.f32.gmra.mrb[24].mxu0 %v363_v4 }
  0xd4   : > { %553 = vmatprep.mubr.f32.mxu0 %v1762_v8 }
  0xd7   : > { %554 = vmatmul.mubr.f32.gmra.mrb[26].mxu0 %v364_v5 }
  0xd8   : > { %559 = vmatprep.mubr.f32.mxu0 %v1762_v8 }
  0xdb   : > { %560 = vmatmul.mubr.f32.gmra.mrb[28].mxu0 %v365_v6 }
  0xdc   : > { %565 = vmatprep.mubr.f32.mxu0 %v1762_v8  ;;  %v880_v8 = vld [vmem:[%s1993_s1 + $0x20] sm:$0xff] }
  0xdd   : > { %v1406_v19 = vpack.c.bf16 %v881_v18, %v880_v8 }
  0xdf   : > { %566 = vmatmul.mubr.f32.gmra.mrb[30].mxu0 %v366_v7  ;;  %1407 = vmatpush3.bf16.msra.mxu1 %v1406_v19 }
  0xe0   : > { %1409 = vmatprep.subr.bf16.mxu1 %v1408_v22 }
  0xe3   : > { %1411 = vmatpush3.bf16.msra.mxu1 %v1410_v25 }
  0xe4   : > { %1413 = vmatprep.subr.bf16.mxu1 %v1412_v28 }
  0xe7   : > { %1415 = vmatpush3.bf16.msra.mxu1 %v1414_v31 }
  0xe8   : > { %1417 = vmatprep.subr.bf16.mxu1 %v1416_v34 }
  0xeb   : > { %1419 = vmatpush3.bf16.msra.mxu1 %v1418_v37 }
  0xec   : > { %1421 = vmatprep.subr.bf16.mxu1 %v1420_v40 }
  0xef   : > { %1423 = vmatpush3.bf16.msra.mxu1 %v1422_v43 }
  0xf0   : > { %1425 = vmatprep.subr.bf16.mxu1 %v1424_v46 }
  0xf3   : > { %1427 = vmatpush3.bf16.msra.mxu1 %v1426_v49 }
 0x176   : > { %v477_v57 = vpop.f32.mrb[0].mxu0 }
 0x177   : > { %v478_v58 = vadd.f32 %v477_v57, %v2081_v55  ;;  %v479_v59 = vpop.f32.mrb[1].mxu0 }
 0x178   : > { %v480_v60 = vadd.f32 %v479_v59, %v2083_v56 }
 0x179   : > { %v604_v61 = vmul.f32 0.044715, %v478_v58  ;;  %v572_v46 = vmul.f32 0.5, %v478_v58 }
 0x17a   : > { %v483_v62 = vpop.f32.mrb[2].mxu0  ;;  %v605_v63 = vmul.f32 0.044715, %v480_v60  ;;  %v573_v51 = vmul.f32 0.5, %v480_v60 }
 0x17b   : > { %v636_v0 = vmul.f32 %v604_v61, %v478_v58  ;;  %v2088_v1 = vadd.f32 %v483_v62, %v2081_v55  ;;  %v485_v2 = vpop.f32.mrb[3].mxu0 }
 0x17c   : > { %v2091_v3 = vadd.f32 %v485_v2, %v2083_v56  ;;  %v637_v4 = vmul.f32 %v605_v63, %v480_v60 }
 0x17d   : > { %v606_v5 = vmul.f32 0.044715, %v2088_v1  ;;  %v668_v6 = vmul.f32 %v636_v0, %v478_v58  ;;  %v574_v2 = vmul.f32 0.5, %v2088_v1 }
 0x17e   : > { %v607_v7 = vmul.f32 0.044715, %v2091_v3  ;;  %v489_v9 = vpop.f32.mrb[4].mxu0  ;;  %v669_v10 = vmul.f32 %v637_v4, %v480_v60 }
 0x17f   : > { %v638_v11 = vmul.f32 %v606_v5, %v2088_v1  ;;  %v2097_v12 = vadd.f32 %v489_v9, %v2081_v55  ;;  %v491_v13 = vpop.f32.mrb[5].mxu0  ;;  %v700_v14 = vadd.f32 %v668_v6, %v478_v58 }
 0x180   : > { %v639_v15 = vmul.f32 %v607_v7, %v2091_v3  ;;  %v2101_v16 = vadd.f32 %v491_v13, %v2083_v56  ;;  %v701_v17 = vadd.f32 %v669_v10, %v480_v60 }
 0x181   : > { %v608_v8 = vmul.f32 0.044715, %v2097_v12  ;;  %v732_v18 = vmul.f32 0.7978846, %v700_v14  ;;  %v670_v19 = vmul.f32 %v638_v11, %v2088_v1 }
 0x182   : > { %v609_v20 = vmul.f32 0.044715, %v2101_v16  ;;  %v495_v21 = vpop.f32.mrb[6].mxu0  ;;  %v733_v22 = vmul.f32 0.7978846, %v701_v17  ;;  %v671_v23 = vmul.f32 %v639_v15, %v2091_v3 }
 0x183   : > { %v640_v24 = vmul.f32 %v608_v8, %v2097_v12  ;;  %v2109_v25 = vadd.f32 %v495_v21, %v2081_v55  ;;  %v497_v26 = vpop.f32.mrb[7].mxu0  ;;  %1515 = vtanh.f32 %v732_v18  ;;  %v702_v27 = vadd.f32 %v670_v19, %v2088_v1 }
 0x184   : > { %v641_v28 = vmul.f32 %v609_v20, %v2101_v16  ;;  %v2114_v29 = vadd.f32 %v497_v26, %v2083_v56  ;;  %1517 = vtanh.f32 %v733_v22  ;;  %v703_v30 = vadd.f32 %v671_v23, %v2091_v3 }
 0x185   : > { %v610_v31 = vmul.f32 0.044715, %v2109_v25  ;;  %v734_v32 = vmul.f32 0.7978846, %v702_v27  ;;  %v672_v33 = vmul.f32 %v640_v24, %v2097_v12  ;;  %v575_v8 = vmul.f32 0.5, %v2091_v3 }
 0x186   : > { %v611_v34 = vmul.f32 0.044715, %v2114_v29  ;;  %v501_v35 = vpop.f32.mrb[8].mxu0  ;;  %v735_v36 = vmul.f32 0.7978846, %v703_v30  ;;  %v673_v37 = vmul.f32 %v641_v28, %v2101_v16  ;;  %v576_v19 = vmul.f32 0.5, %v2097_v12 }
 0x187   : > { %v642_v38 = vmul.f32 %v610_v31, %v2109_v25  ;;  %v2123_v39 = vadd.f32 %v501_v35, %v2081_v55  ;;  %v503_v40 = vpop.f32.mrb[9].mxu0  ;;  %1519 = vtanh.f32 %v734_v32  ;;  %v704_v41 = vadd.f32 %v672_v33, %v2097_v12 }
 0x188   : > { %v643_v42 = vmul.f32 %v611_v34, %v2114_v29  ;;  %v2128_v43 = vadd.f32 %v503_v40, %v2083_v56  ;;  %1521 = vtanh.f32 %v735_v36  ;;  %v705_v44 = vadd.f32 %v673_v37, %v2101_v16 }
 0x189   : > { %v612_v45 = vmul.f32 0.044715, %v2123_v39  ;;  %v736_v47 = vmul.f32 0.7978846, %v704_v41  ;;  %v674_v48 = vmul.f32 %v642_v38, %v2109_v25 }
 0x18a   : > { %v613_v49 = vmul.f32 0.044715, %v2128_v43  ;;  %v507_v50 = vpop.f32.mrb[10].mxu0  ;;  %v737_v52 = vmul.f32 0.7978846, %v705_v44  ;;  %v675_v53 = vmul.f32 %v643_v42, %v2114_v29 }
 0x18b   : > { %v644_v54 = vmul.f32 %v612_v45, %v2123_v39  ;;  %v2137_v57 = vadd.f32 %v507_v50, %v2081_v55  ;;  %v509_v59 = vpop.f32.mrb[11].mxu0  ;;  %1523 = vtanh.f32 %v736_v47  ;;  %v706_v61 = vadd.f32 %v674_v48, %v2109_v25 }
 0x18c   : > { %v645_v58 = vmul.f32 %v613_v49, %v2128_v43  ;;  %v2142_v62 = vadd.f32 %v509_v59, %v2083_v56  ;;  %1525 = vtanh.f32 %v737_v52  ;;  %v707_v60 = vadd.f32 %v675_v53, %v2114_v29 }
 0x18d   : > { %v1516_v63 = vpop.eup %1515  ;;  %v614_v0 = vmul.f32 0.044715, %v2137_v57  ;;  %v738_v4 = vmul.f32 0.7978846, %v706_v61  ;;  %v676_v5 = vmul.f32 %v644_v54, %v2123_v39  ;;  %v577_v52 = vmul.f32 0.5, %v2101_v16 }
 0x18e   : > { %v1518_v6 = vpop.eup %1517  ;;  %v615_v7 = vmul.f32 0.044715, %v2142_v62  ;;  %v513_v9 = vpop.f32.mrb[12].mxu0  ;;  %v796_v10 = vadd.f32 1.0, %v1516_v63  ;;  %v739_v11 = vmul.f32 0.7978846, %v707_v60  ;;  %v677_v13 = vmul.f32 %v645_v58, %v2128_v43 }
 0x18f   : > { %v2151_v14 = vadd.f32 %v513_v9, %v2081_v55  ;;  %v515_v15 = vpop.f32.mrb[13].mxu0  ;;  %v797_v17 = vadd.f32 1.0, %v1518_v6  ;;  %1527 = vtanh.f32 %v738_v4  ;;  %v646_v21 = vmul.f32 %v614_v0, %v2137_v57 }
 0x190   : > { %v647_v1 = vmul.f32 %v615_v7, %v2142_v62  ;;  %v2156_v18 = vadd.f32 %v515_v15, %v2083_v56  ;;  %1529 = vtanh.f32 %v739_v11  ;;  %v709_v23 = vadd.f32 %v677_v13, %v2128_v43 }
 0x191   : > { %v1520_v20 = vpop.eup %1519  ;;  %v829_v22 = vmul.f32 %v797_v17, %v573_v51  ;;  %v708_v24 = vadd.f32 %v676_v5, %v2123_v39  ;;  %v828_v28 = vmul.f32 %v796_v10, %v572_v46  ;;  %v616_v32 = vmul.f32 0.044715, %v2151_v14 }
 0x192   : > { %v1522_v26 = vpop.eup %1521  ;;  %v617_v3 = vmul.f32 0.044715, %v2156_v18  ;;  %v519_v27 = vpop.f32.mrb[14].mxu0  ;;  %v798_v30 = vadd.f32 1.0, %v1520_v20  ;;  %v679_v31 = vmul.f32 %v647_v1, %v2142_v62  ;;  %v741_v34 = vmul.f32 0.7978846, %v709_v23 }
 0x193   : > { %v521_v12 = vpop.f32.mrb[15].mxu0  ;;  %972 = vmatprep.mubr.f32.mxu1 %v829_v22  ;;  %v799_v33 = vadd.f32 1.0, %v1522_v26  ;;  %v2167_v36 = vadd.f32 %v519_v27, %v2081_v55  ;;  %v740_v38 = vmul.f32 0.7978846, %v708_v24  ;;  %v678_v49 = vmul.f32 %v646_v21, %v2137_v57 }
 0x194   : > { %v649_v35 = vmul.f32 %v617_v3, %v2156_v18  ;;  %v2170_v37 = vadd.f32 %v521_v12, %v2083_v56  ;;  %973 = vmatmul.mubr.f32.vlgmr.msra.gmra.mrb[0].mxu1 %v828_v28  ;;  %v830_v42 = vmul.f32 %v798_v30, %v574_v2  ;;  %1531 = vtanh.f32 %v741_v34 }
 0x195   : > { %v1524_v40 = vpop.eup %1523  ;;  %v831_v41 = vmul.f32 %v799_v33, %v575_v8  ;;  %v711_v44 = vadd.f32 %v679_v31, %v2142_v62  ;;  %1533 = vtanh.f32 %v740_v38  ;;  %v648_v59 = vmul.f32 %v616_v32, %v2151_v14 }
 0x196   : > { %v1526_v45 = vpop.eup %1525  ;;  %v619_v46 = vmul.f32 0.044715, %v2170_v37  ;;  %v525_v47 = vpop.f32.mrb[16].mxu0  ;;  %v800_v48 = vadd.f32 1.0, %v1524_v40  ;;  %v578_v58 = vmul.f32 0.5, %v2109_v25  ;;  %v710_v60 = vadd.f32 %v678_v49, %v2137_v57 }
 0x197   : > { %v2176_v50 = vadd.f32 %v525_v47, %v2081_v55  ;;  %v527_v51 = vpop.f32.mrb[17].mxu0  ;;  %977 = vmatprep.mubr.f32.mxu1 %v831_v41  ;;  %v801_v53 = vadd.f32 1.0, %v1526_v45  ;;  %v743_v54 = vmul.f32 0.7978846, %v711_v44  ;;  %v618_v0 = vmul.f32 0.044715, %v2167_v36 }
 0x198   : > { %v2181_v61 = vadd.f32 %v527_v51, %v2083_v56  ;;  %978 = vmatmul.mubr.f32.gmra.mrb[2].mxu1 %v830_v42  ;;  %v651_v2 = vmul.f32 %v619_v46, %v2170_v37  ;;  %v832_v6 = vmul.f32 %v800_v48, %v576_v19  ;;  %v742_v9 = vmul.f32 0.7978846, %v710_v60 }
 0x199   : > { %v1528_v63 = vpop.eup %1527  ;;  %v833_v4 = vmul.f32 %v801_v53, %v577_v52  ;;  %1535 = vtanh.f32 %v743_v54  ;;  %v681_v10 = vmul.f32 %v649_v35, %v2156_v18  ;;  %v620_v11 = vmul.f32 0.044715, %v2176_v50 }
 0x19a   : > { %v1530_v16 = vpop.eup %1529  ;;  %v531_v5 = vpop.f32.mrb[18].mxu0  ;;  %v802_v7 = vadd.f32 1.0, %v1528_v63  ;;  %v579_v25 = vmul.f32 0.5, %v2114_v29  ;;  %v580_v17 = vmul.f32 0.5, %v2123_v39  ;;  %v621_v8 = vmul.f32 0.044715, %v2181_v61 }
 0x19b   : > { %v533_v13 = vpop.f32.mrb[19].mxu0  ;;  %982 = vmatprep.mubr.f32.mxu1 %v833_v4  ;;  %v803_v15 = vadd.f32 1.0, %v1530_v16  ;;  %v581_v1 = vmul.f32 0.5, %v2128_v43  ;;  %v2194_v19 = vmul.f32 0.5, %v2137_v57  ;;  %1537 = vtanh.f32 %v742_v9 }
 0x19c   : > { %983 = vmatmul.mubr.f32.gmra.mrb[4].mxu1 %v832_v6  ;;  %v583_v21 = vmul.f32 0.5, %v2142_v62  ;;  %v713_v22 = vadd.f32 %v681_v10, %v2156_v18  ;;  %v680_v23 = vmul.f32 %v648_v59, %v2151_v14  ;;  %v650_v29 = vmul.f32 %v618_v0, %v2167_v36 }
 0x19d   : > { %v835_v20 = vmul.f32 %v803_v15, %v579_v25  ;;  %v2201_v39 = vadd.f32 %v533_v13, %v2083_v56  ;;  %v834_v26 = vmul.f32 %v802_v7, %v578_v58  ;;  %v683_v43 = vmul.f32 %v651_v2, %v2170_v37 }
 0x19e   : > { %v537_v24 = vpop.f32.mrb[20].mxu0  ;;  %v1532_v3 = vpop.eup %1531  ;;  %v652_v57 = vmul.f32 %v620_v11, %v2176_v50  ;;  %v2206_v27 = vadd.f32 %v531_v5, %v2081_v55  ;;  %v745_v28 = vmul.f32 0.7978846, %v713_v22  ;;  %v712_v30 = vadd.f32 %v680_v23, %v2151_v14 }
 0x19f   : > { %v539_v62 = vpop.f32.mrb[21].mxu0  ;;  %987 = vmatprep.mubr.f32.mxu1 %v835_v20  ;;  %v1534_v31 = vpop.eup %1533  ;;  %v653_v32 = vmul.f32 %v621_v8, %v2181_v61  ;;  %v2211_v12 = vadd.f32 %v537_v24, %v2081_v55  ;;  %v805_v33 = vadd.f32 1.0, %v1532_v3  ;;  %v715_v34 = vadd.f32 %v683_v43, %v2170_v37 }
 0x1a0   : > { %988 = vmatmul.mubr.f32.gmra.mrb[6].mxu1 %v834_v26  ;;  %v2215_v35 = vadd.f32 %v539_v62, %v2083_v56  ;;  %v804_v38 = vadd.f32 1.0, %v1534_v31  ;;  %1539 = vtanh.f32 %v745_v28  ;;  %v744_v40 = vmul.f32 0.7978846, %v712_v30 }
 0x1a1   : > { %v623_v41 = vmul.f32 0.044715, %v2201_v39  ;;  %v837_v44 = vmul.f32 %v805_v33, %v581_v1  ;;  %v747_v45 = vmul.f32 0.7978846, %v715_v34  ;;  %v682_v46 = vmul.f32 %v650_v29, %v2167_v36 }
 0x1a2   : > { %v543_v42 = vpop.f32.mrb[22].mxu0  ;;  %v622_v48 = vmul.f32 0.044715, %v2206_v27  ;;  %v836_v51 = vmul.f32 %v804_v38, %v580_v17  ;;  %v585_v52 = vmul.f32 0.5, %v2156_v18  ;;  %1541 = vtanh.f32 %v744_v40 }
 0x1a3   : > { %v1536_v47 = vpop.eup %1535  ;;  %v545_v49 = vpop.f32.mrb[23].mxu0  ;;  %v624_v53 = vmul.f32 0.044715, %v2211_v12  ;;  %992 = vmatprep.mubr.f32.mxu1 %v837_v44  ;;  %v584_v59 = vmul.f32 0.5, %v2151_v14  ;;  %1543 = vtanh.f32 %v747_v45  ;;  %v625_v58 = vmul.f32 0.044715, %v2215_v35 }
 0x1a4   : > { %v807_v54 = vadd.f32 1.0, %v1536_v47  ;;  %v2225_v60 = vadd.f32 %v543_v42, %v2081_v55  ;;  %993 = vmatmul.mubr.f32.gmra.mrb[8].mxu1 %v836_v51  ;;  %v714_v63 = vadd.f32 %v682_v46, %v2167_v36  ;;  %v685_v0 = vmul.f32 %v653_v32, %v2181_v61 }
 0x1a5   : > { %v1538_v2 = vpop.eup %1537  ;;  %v655_v18 = vmul.f32 %v623_v41, %v2201_v39  ;;  %v2231_v4 = vadd.f32 %v545_v49, %v2083_v56  ;;  %v684_v14 = vmul.f32 %v652_v57, %v2176_v50  ;;  %v654_v6 = vmul.f32 %v622_v48, %v2206_v27 }
 0x1a6   : > { %v549_v16 = vpop.f32.mrb[24].mxu0  ;;  %v839_v5 = vmul.f32 %v807_v54, %v583_v21  ;;  %v806_v9 = vadd.f32 1.0, %v1538_v2  ;;  %v587_v10 = vmul.f32 0.5, %v2170_v37  ;;  %v746_v11 = vmul.f32 0.7978846, %v714_v63 }
 0x1a7   : > { %v551_v7 = vpop.f32.mrb[25].mxu0  ;;  %v656_v13 = vmul.f32 %v624_v53, %v2211_v12  ;;  %v2238_v25 = vmul.f32 0.5, %v2167_v36  ;;  %v717_v15 = vadd.f32 %v685_v0, %v2181_v61  ;;  %v716_v17 = vadd.f32 %v684_v14, %v2176_v50 }
 0x1a8   : > { %997 = vmatprep.mubr.f32.mxu1 %v839_v5  ;;  %v657_v8 = vmul.f32 %v625_v58, %v2215_v35  ;;  %v626_v1 = vmul.f32 0.044715, %v2225_v60  ;;  %v838_v20 = vmul.f32 %v806_v9, %v2194_v19  ;;  %1545 = vtanh.f32 %v746_v11 }
 0x1a9   : > { %v627_v37 = vmul.f32 0.044715, %v2231_v4  ;;  %v2247_v22 = vmul.f32 0.5, %v2181_v61  ;;  %v749_v23 = vmul.f32 0.7978846, %v717_v15  ;;  %v687_v36 = vmul.f32 %v655_v18, %v2201_v39 }
 0x1aa   : > { %v555_v21 = vpop.f32.mrb[26].mxu0  ;;  %v1540_v29 = vpop.eup %1539  ;;  %v2251_v24 = vadd.f32 %v549_v16, %v2081_v55  ;;  %998 = vmatmul.mubr.f32.gmra.mrb[10].mxu1 %v838_v20  ;;  %v748_v19 = vmul.f32 0.7978846, %v716_v17  ;;  %v686_v3 = vmul.f32 %v654_v6, %v2206_v27  ;;  %v2258_v57 = vadd.f32 %v551_v7, %v2083_v56 }
 0x1ab   : > { %v2254_v26 = vadd.f32 %v555_v21, %v2081_v55  ;;  %v557_v43 = vpop.f32.mrb[27].mxu0  ;;  %v809_v61 = vadd.f32 1.0, %v1540_v29  ;;  %1547 = vtanh.f32 %v749_v23  ;;  %v2261_v62 = vmul.f32 0.5, %v2176_v50 }
 0x1ac   : > { %v1542_v28 = vpop.eup %1541  ;;  %v658_v30 = vmul.f32 %v626_v1, %v2225_v60  ;;  %1549 = vtanh.f32 %v748_v19  ;;  %v719_v31 = vadd.f32 %v687_v36, %v2201_v39  ;;  %v718_v32 = vadd.f32 %v686_v3, %v2206_v27 }
 0x1ad   : > { %v1544_v33 = vpop.eup %1543  ;;  %v659_v34 = vmul.f32 %v627_v37, %v2231_v4  ;;  %v2268_v38 = vadd.f32 %v557_v43, %v2083_v56  ;;  %v841_v40 = vmul.f32 %v809_v61, %v585_v52  ;;  %v808_v41 = vadd.f32 1.0, %v1542_v28 }
 0x1ae   : > { %v561_v42 = vpop.f32.mrb[28].mxu0  ;;  %v628_v50 = vmul.f32 0.044715, %v2251_v24  ;;  %v811_v46 = vadd.f32 1.0, %v1544_v33  ;;  %v751_v47 = vmul.f32 0.7978846, %v719_v31  ;;  %v689_v58 = vmul.f32 %v657_v8, %v2215_v35 }
 0x1af   : > { %v2272_v44 = vadd.f32 %v561_v42, %v2081_v55  ;;  %v563_v45 = vpop.f32.mrb[29].mxu0  ;;  %v629_v48 = vmul.f32 0.044715, %v2258_v57  ;;  %1002 = vmatprep.mubr.f32.mxu1 %v841_v40  ;;  %v840_v49 = vmul.f32 %v808_v41, %v584_v59  ;;  %v750_v53 = vmul.f32 0.7978846, %v718_v32 }
 0x1b0   : > { %v2276_v51 = vadd.f32 %v563_v45, %v2083_v56  ;;  %v630_v52 = vmul.f32 0.044715, %v2254_v26  ;;  %v843_v54 = vmul.f32 %v811_v46, %v587_v10  ;;  %1551 = vtanh.f32 %v751_v47 }
 0x1b1   : > { %v631_v63 = vmul.f32 0.044715, %v2268_v38  ;;  %1003 = vmatmul.mubr.f32.gmra.mrb[12].mxu1 %v840_v49  ;;  %v591_v2 = vmul.f32 0.5, %v2201_v39  ;;  %1553 = vtanh.f32 %v750_v53  ;;  %v688_v18 = vmul.f32 %v656_v13, %v2211_v12 }
 0x1b2   : > { %v567_v0 = vpop.f32.mrb[30].mxu0  ;;  %v1546_v59 = vpop.eup %1545  ;;  %v660_v16 = vmul.f32 %v628_v50, %v2251_v24  ;;  %1007 = vmatprep.mubr.f32.mxu1 %v843_v54  ;;  %v590_v6 = vmul.f32 0.5, %v2206_v27  ;;  %v721_v7 = vadd.f32 %v689_v58, %v2215_v35  ;;  %v661_v9 = vmul.f32 %v629_v48, %v2258_v57 }
 0x1b3   : > { %v2285_v5 = vadd.f32 %v567_v0, %v2081_v55  ;;  %v569_v14 = vpop.f32.mrb[31].mxu0  ;;  %v810_v10 = vadd.f32 1.0, %v1546_v59  ;;  %v720_v11 = vadd.f32 %v688_v18, %v2211_v12  ;;  %v662_v13 = vmul.f32 %v630_v52, %v2254_v26 }
 0x1b4   : > { %v2291_v39 = vadd.f32 %v569_v14, %v2083_v56  ;;  %v633_v15 = vmul.f32 0.044715, %v2276_v51  ;;  %v753_v17 = vmul.f32 0.7978846, %v721_v7  ;;  %v691_v55 = vmul.f32 %v659_v34, %v2231_v4 }
 0x1b5   : > { %v1548_v8 = vpop.eup %1547  ;;  %v663_v27 = vmul.f32 %v631_v63, %v2268_v38  ;;  %v842_v1 = vmul.f32 %v810_v10, %v2238_v25  ;;  %v752_v20 = vmul.f32 0.7978846, %v720_v11  ;;  %v690_v37 = vmul.f32 %v658_v30, %v2225_v60 }
 0x1b6   : > { %v1550_v21 = vpop.eup %1549  ;;  %v632_v56 = vmul.f32 0.044715, %v2272_v44  ;;  %v813_v23 = vadd.f32 1.0, %v1548_v8  ;;  %1555 = vtanh.f32 %v753_v17  ;;  %v723_v36 = vadd.f32 %v691_v55, %v2231_v4 }
 0x1b7   : > { %1008 = vmatmul.mubr.f32.gmra.mrb[14].mxu1 %v842_v1  ;;  %v635_v29 = vmul.f32 0.044715, %v2291_v39  ;;  %v812_v43 = vadd.f32 1.0, %v1550_v21  ;;  %1557 = vtanh.f32 %v752_v20  ;;  %v722_v19 = vadd.f32 %v690_v37, %v2225_v60 }
 0x1b8   : > { %v665_v3 = vmul.f32 %v633_v15, %v2276_v51  ;;  %v845_v25 = vmul.f32 %v813_v23, %v2247_v22  ;;  %v755_v61 = vmul.f32 0.7978846, %v723_v36  ;;  %v693_v28 = vmul.f32 %v661_v9, %v2258_v57 }
 0x1b9   : > { %v634_v30 = vmul.f32 0.044715, %v2285_v5  ;;  %v844_v31 = vmul.f32 %v812_v43, %v2261_v62  ;;  %v754_v32 = vmul.f32 0.7978846, %v722_v19  ;;  %v692_v33 = vmul.f32 %v660_v16, %v2251_v24 }
 0x1ba   : > { %v1552_v34 = vpop.eup %1551  ;;  %v664_v40 = vmul.f32 %v632_v56, %v2272_v44  ;;  %1012 = vmatprep.mubr.f32.mxu1 %v845_v25  ;;  %1559 = vtanh.f32 %v755_v61  ;;  %v725_v41 = vadd.f32 %v693_v28, %v2258_v57  ;;  %v695_v42 = vmul.f32 %v663_v27, %v2268_v38 }
 0x1bb   : > { %v1554_v22 = vpop.eup %1553  ;;  %v667_v50 = vmul.f32 %v635_v29, %v2291_v39  ;;  %1013 = vmatmul.mubr.f32.gmra.mrb[16].mxu1 %v844_v31  ;;  %v815_v45 = vadd.f32 1.0, %v1552_v34  ;;  %1561 = vtanh.f32 %v754_v32  ;;  %v724_v62 = vadd.f32 %v692_v33, %v2251_v24 }
 0x1bc   : > { %v814_v46 = vadd.f32 1.0, %v1554_v22  ;;  %v757_v47 = vmul.f32 0.7978846, %v725_v41  ;;  %v727_v48 = vadd.f32 %v695_v42, %v2268_v38  ;;  %v694_v49 = vmul.f32 %v662_v13, %v2254_v26 }
 0x1bd   : > { %v666_v53 = vmul.f32 %v634_v30, %v2285_v5  ;;  %v847_v52 = vmul.f32 %v815_v45, %v591_v2  ;;  %v756_v54 = vmul.f32 0.7978846, %v724_v62  ;;  %v697_v58 = vmul.f32 %v665_v3, %v2276_v51 }
 0x1be   : > { %v846_v63 = vmul.f32 %v814_v46, %v590_v6  ;;  %1563 = vtanh.f32 %v757_v47  ;;  %v759_v0 = vmul.f32 0.7978846, %v727_v48  ;;  %v726_v18 = vadd.f32 %v694_v49, %v2254_v26 }
 0x1bf   : > { %1017 = vmatprep.mubr.f32.mxu1 %v847_v52  ;;  %1565 = vtanh.f32 %v756_v54  ;;  %v729_v59 = vadd.f32 %v697_v58, %v2276_v51  ;;  %v696_v16 = vmul.f32 %v664_v40, %v2272_v44  ;;  %v593_v7 = vmul.f32 0.5, %v2215_v35 }
 0x1c0   : > { %v1556_v14 = vpop.eup %1555  ;;  %1018 = vmatmul.mubr.f32.gmra.mrb[18].mxu1 %v846_v63  ;;  %1567 = vtanh.f32 %v759_v0  ;;  %v758_v2 = vmul.f32 0.7978846, %v726_v18  ;;  %v699_v9 = vmul.f32 %v667_v50, %v2291_v39  ;;  %v592_v11 = vmul.f32 0.5, %v2211_v12 }
 0x1c1   : > { %v1558_v10 = vpop.eup %1557  ;;  %v817_v6 = vadd.f32 1.0, %v1556_v14  ;;  %v761_v13 = vmul.f32 0.7978846, %v729_v59  ;;  %v728_v15 = vadd.f32 %v696_v16, %v2272_v44  ;;  %v698_v8 = vmul.f32 %v666_v53, %v2285_v5  ;;  %v860_v59 = vld [vmem:[#allocation2] sm:$0xff] }
 0x1c2   : > { %v816_v17 = vadd.f32 1.0, %v1558_v10  ;;  %1569 = vtanh.f32 %v758_v2  ;;  %v731_v55 = vadd.f32 %v699_v9, %v2291_v39  ;;  %v595_v12 = vmul.f32 0.5, %v2231_v4  ;;  %v861_v2 = vld [vmem:[#allocation2 + $0x8] sm:$0xff] }
 0x1c3   : > { %v849_v27 = vmul.f32 %v817_v6, %v593_v7  ;;  %1571 = vtanh.f32 %v761_v13  ;;  %v760_v35 = vmul.f32 0.7978846, %v728_v15  ;;  %v730_v21 = vadd.f32 %v698_v8, %v2285_v5 }
 0x1c4   : > { %v1560_v1 = vpop.eup %1559  ;;  %v848_v20 = vmul.f32 %v816_v17, %v592_v11  ;;  %v763_v37 = vmul.f32 0.7978846, %v731_v55  ;;  %v594_v36 = vmul.f32 0.5, %v2225_v60  ;;  %v597_v28 = vmul.f32 0.5, %v2258_v57  ;;  %v862_v11 = vld [vmem:[#allocation2 + $0x10] sm:$0xff]  ;;  %v863_v55 = vld [vmem:[#allocation2 + $0x18] sm:$0xff] }
 0x1c5   : > { %v1562_v56 = vpop.eup %1561  ;;  %1022 = vmatprep.mubr.f32.mxu1 %v849_v27  ;;  %v819_v23 = vadd.f32 1.0, %v1560_v1  ;;  %1573 = vtanh.f32 %v760_v35  ;;  %v762_v43 = vmul.f32 0.7978846, %v730_v21  ;;  %v596_v4 = vmul.f32 0.5, %v2251_v24 }
 0x1c6   : > { %1023 = vmatmul.mubr.f32.gmra.mrb[20].mxu1 %v848_v20  ;;  %v818_v29 = vadd.f32 1.0, %v1562_v56  ;;  %1575 = vtanh.f32 %v763_v37  ;;  %v599_v60 = vmul.f32 0.5, %v2268_v38  ;;  %v598_v45 = vmul.f32 0.5, %v2254_v26  ;;  %v864_v20 = vld [vmem:[#allocation2 + $0x20] sm:$0xff] }
 0x1c7   : > { %v851_v19 = vmul.f32 %v819_v23, %v595_v12  ;;  %1577 = vtanh.f32 %v762_v43  ;;  %v601_v57 = vmul.f32 0.5, %v2276_v51  ;;  %v603_v38 = vmul.f32 0.5, %v2291_v39  ;;  %v865_v23 = vld [vmem:[#allocation2 + $0x28] sm:$0xff] }
 0x1c8   : > { %v1564_v3 = vpop.eup %1563  ;;  %v850_v25 = vmul.f32 %v818_v29, %v594_v36  ;;  %v600_v54 = vmul.f32 0.5, %v2272_v44  ;;  %v602_v51 = vmul.f32 0.5, %v2285_v5 }
 0x1c9   : > { %v1566_v61 = vpop.eup %1565  ;;  %1027 = vmatprep.mubr.f32.mxu1 %v851_v19  ;;  %v821_v30 = vadd.f32 1.0, %v1564_v3  ;;  %v866_v3 = vld [vmem:[#allocation2 + $0x30] sm:$0xff] }
 0x1ca   : > { %v1568_v31 = vpop.eup %1567  ;;  %1028 = vmatmul.mubr.f32.gmra.mrb[22].mxu1 %v850_v25  ;;  %v820_v32 = vadd.f32 1.0, %v1566_v61 }
 0x1cb   : > { %v853_v33 = vmul.f32 %v821_v30, %v597_v28  ;;  %v823_v34 = vadd.f32 1.0, %v1568_v31  ;;  %v867_v31 = vld [vmem:[#allocation2 + $0x38] sm:$0xff] }
 0x1cc   : > { %v1570_v40 = vpop.eup %1569  ;;  %v852_v41 = vmul.f32 %v820_v32, %v596_v4 }
 0x1cd   : > { %v1572_v42 = vpop.eup %1571  ;;  %1032 = vmatprep.mubr.f32.mxu1 %v853_v33  ;;  %v855_v22 = vmul.f32 %v823_v34, %v599_v60  ;;  %v822_v50 = vadd.f32 1.0, %v1570_v40  ;;  %v868_v34 = vld [vmem:[#allocation2 + $0x40] sm:$0xff] }
 0x1ce   : > { %1033 = vmatmul.mubr.f32.gmra.mrb[24].mxu1 %v852_v41  ;;  %v825_v62 = vadd.f32 1.0, %v1572_v42 }
 0x1cf   : > { %v1574_v46 = vpop.eup %1573  ;;  %1037 = vmatprep.mubr.f32.mxu1 %v855_v22  ;;  %v854_v47 = vmul.f32 %v822_v50, %v598_v45  ;;  %v869_v50 = vld [vmem:[#allocation2 + $0x48] sm:$0xff] }
 0x1d0   : > { %v1576_v24 = vpop.eup %1575  ;;  %v857_v48 = vmul.f32 %v825_v62, %v601_v57  ;;  %v824_v49 = vadd.f32 1.0, %v1574_v46 }
 0x1d1   : > { %v827_v53 = vadd.f32 1.0, %v1576_v24  ;;  %v1578_v52 = vpop.eup %1577  ;;  %v870_v24 = vld [vmem:[#allocation2 + $0x50] sm:$0xff] }
 0x1d2   : > { %1038 = vmatmul.mubr.f32.gmra.mrb[26].mxu1 %v854_v47  ;;  %v856_v63 = vmul.f32 %v824_v49, %v600_v54  ;;  %v826_v26 = vadd.f32 1.0, %v1578_v52 }
 0x1d3   : > { %1042 = vmatprep.mubr.f32.mxu1 %v857_v48  ;;  %v859_v58 = vmul.f32 %v827_v53, %v603_v38  ;;  %v871_v53 = vld [vmem:[#allocation2 + $0x58] sm:$0xff] }
 0x1d4   : > { %v858_v0 = vmul.f32 %v826_v26, %v602_v51  ;;  %v872_v26 = vld [vmem:[#allocation2 + $0x60] sm:$0xff] }
 0x1d6   : > { %1043 = vmatmul.mubr.f32.gmra.mrb[28].mxu1 %v856_v63 }
 0x1d7   : > { %1047 = vmatprep.mubr.f32.mxu1 %v859_v58 }
 0x1da   : > { %1048 = vmatmul.mubr.f32.gmra.mrb[30].mxu1 %v858_v0 }
 0x267   : > { %v1316_v18 = vpop.f32.mrb[0].mxu1 }
 0x268   : > { %v1317_v16 = vpop.f32.mrb[1].mxu1 }
 0x269   : > { %v1318_v14 = vadd.f32 %v1317_v16, %v1316_v18  ;;  %v873_v16 = vld [vmem:[#allocation2 + $0x68] sm:$0xff] }
 0x26b   : > { %v1053_v39 = vadd.f32 %v1318_v14, %v860_v59  ;;  %v1319_v7 = vpop.f32.mrb[2].mxu1 }
 0x26c   : > { %v1320_v9 = vpop.f32.mrb[3].mxu1 }
 0x26d   : > { %1069 = vst [vmem:[#allocation2] sm:$0xff] %v1053_v39  ;;  %v1321_v44 = vadd.f32 %v1320_v9, %v1319_v7  ;;  %v874_v9 = vld [vmem:[#allocation2 + $0x70] sm:$0xff] }
 0x26f   : > { %v1054_v10 = vadd.f32 %v1321_v44, %v861_v2  ;;  %v1322_v6 = vpop.f32.mrb[4].mxu1 }
 0x270   : > { %v1323_v13 = vpop.f32.mrb[5].mxu1 }
 0x271   : > { %1070 = vst [vmem:[#allocation2 + $0x8] sm:$0xff] %v1054_v10  ;;  %v1324_v15 = vadd.f32 %v1323_v13, %v1322_v6  ;;  %v875_v13 = vld [vmem:[#allocation2 + $0x78] sm:$0xff] }
 0x273   : > { %v1055_v5 = vadd.f32 %v1324_v15, %v862_v11  ;;  %v1325_v17 = vpop.f32.mrb[6].mxu1 }
 0x274   : > { %v1326_v8 = vpop.f32.mrb[7].mxu1 }
 0x275   : > { %1071 = vst [vmem:[#allocation2 + $0x10] sm:$0xff] %v1055_v5  ;;  %v1327_v27 = vadd.f32 %v1326_v8, %v1325_v17  ;;  %v1277_v8 = vld [vmem:[%s2388_s4] ss:$0 sm:$0xff] (!%p1276_p5) }
 0x277   : > { %v1056_v35 = vadd.f32 %v1327_v27, %v863_v55  ;;  %v1328_v1 = vpop.f32.mrb[8].mxu1  ;;  %v1089_v55 = vld [vmem:[#allocation2] sm:$0xff] (!%p1276_p5) }
 0x278   : > { %v1329_v37 = vpop.f32.mrb[9].mxu1  ;;  %v1090_v27 = vld [vmem:[#allocation2 + $0x8] sm:$0xff] (!%p1276_p5) }
 0x279   : > { %1072 = vst [vmem:[#allocation2 + $0x18] sm:$0xff] %v1056_v35  ;;  %v1330_v21 = vadd.f32 %v1329_v37, %v1328_v1  ;;  %v1112_v35 = vadd.f32 (!%p1276_p5), %v1277_v8, %v1089_v55  ;;  %v1113_v1 = vadd.f32 (!%p1276_p5), %v1277_v8, %v1090_v27 }
 0x27b   : > { %v1057_v56 = vadd.f32 %v1330_v21, %v864_v20  ;;  %1128 = vst [vmem:[#allocation9] sm:$0xff] (!%p1276_p5), %v1112_v35  ;;  %1129 = vst [vmem:[#allocation9 + $0x8] sm:$0xff] (!%p1276_p5), %v1113_v1 }
 0x27c   : > { %v1091_v20 = vld [vmem:[#allocation2 + $0x10] sm:$0xff] (!%p1276_p5) }
 0x27d   : > { %1073 = vst [vmem:[#allocation2 + $0x20] sm:$0xff] %v1057_v56  ;;  %v1331_v12 = vpop.f32.mrb[10].mxu1  ;;  %v1114_v56 = vadd.f32 (!%p1276_p5), %v1277_v8, %v1091_v20 }
 0x27e   : > { %v1332_v36 = vpop.f32.mrb[11].mxu1 }
 0x27f   : > { %v1333_v29 = vadd.f32 %v1332_v36, %v1331_v12  ;;  %1130 = vst [vmem:[#allocation9 + $0x10] sm:$0xff] (!%p1276_p5), %v1114_v56 }
 0x280   : > { %v1092_v37 = vld [vmem:[#allocation2 + $0x18] sm:$0xff] (!%p1276_p5) }
 0x281   : > { %v1058_v43 = vadd.f32 %v1333_v29, %v865_v23  ;;  %v1115_v12 = vadd.f32 (!%p1276_p5), %v1277_v8, %v1092_v37 }
 0x283   : > { %1074 = vst [vmem:[#allocation2 + $0x28] sm:$0xff] %v1058_v43  ;;  %1131 = vst [vmem:[#allocation9 + $0x18] sm:$0xff] (!%p1276_p5), %v1115_v12 }
 0x284   : > { %v1334_v19 = vpop.f32.mrb[12].mxu1  ;;  %v1093_v21 = vld [vmem:[#allocation2 + $0x20] sm:$0xff] (!%p1276_p5) }
 0x285   : > { %v1335_v25 = vpop.f32.mrb[13].mxu1  ;;  %v1116_v23 = vadd.f32 (!%p1276_p5), %v1277_v8, %v1093_v21 }
 0x286   : > { %v1336_v61 = vadd.f32 %v1335_v25, %v1334_v19 }
 0x287   : > { %1132 = vst [vmem:[#allocation9 + $0x20] sm:$0xff] (!%p1276_p5), %v1116_v23 }
 0x288   : > { %v1059_v28 = vadd.f32 %v1336_v61, %v866_v3 }
 0x28a   : > { %1075 = vst [vmem:[#allocation2 + $0x30] sm:$0xff] %v1059_v28  ;;  %v1337_v30 = vpop.f32.mrb[14].mxu1  ;;  %v1094_v36 = vld [vmem:[#allocation2 + $0x28] sm:$0xff] (!%p1276_p5) }
 0x28b   : > { %v1338_v4 = vpop.f32.mrb[15].mxu1  ;;  %v1117_v19 = vadd.f32 (!%p1276_p5), %v1277_v8, %v1094_v36 }
 0x28c   : > { %v1339_v32 = vadd.f32 %v1338_v4, %v1337_v30 }
 0x28d   : > { %1133 = vst [vmem:[#allocation9 + $0x28] sm:$0xff] (!%p1276_p5), %v1117_v19 }
 0x28e   : > { %v1060_v33 = vadd.f32 %v1339_v32, %v867_v31  ;;  %v1340_v60 = vpop.f32.mrb[16].mxu1 }
 0x28f   : > { %v1341_v40 = vpop.f32.mrb[17].mxu1 }
 0x290   : > { %1076 = vst [vmem:[#allocation2 + $0x38] sm:$0xff] %v1060_v33  ;;  %v1342_v41 = vadd.f32 %v1341_v40, %v1340_v60 }
 0x291   : > { %v1095_v29 = vld [vmem:[#allocation2 + $0x30] sm:$0xff] (!%p1276_p5) }
 0x292   : > { %v1061_v42 = vadd.f32 %v1342_v41, %v868_v34  ;;  %v1118_v3 = vadd.f32 (!%p1276_p5), %v1277_v8, %v1095_v29 }
 0x293   : > { %v1343_v22 = vpop.f32.mrb[18].mxu1 }
 0x294   : > { %1077 = vst [vmem:[#allocation2 + $0x40] sm:$0xff] %v1061_v42  ;;  %v1344_v45 = vpop.f32.mrb[19].mxu1  ;;  %1134 = vst [vmem:[#allocation9 + $0x30] sm:$0xff] (!%p1276_p5), %v1118_v3 }
 0x295   : > { %v1345_v57 = vadd.f32 %v1344_v45, %v1343_v22 }
 0x297   : > { %v1062_v62 = vadd.f32 %v1345_v57, %v869_v50  ;;  %v1096_v43 = vld [vmem:[#allocation2 + $0x38] sm:$0xff] (!%p1276_p5) }
 0x298   : > { %v1119_v25 = vadd.f32 (!%p1276_p5), %v1277_v8, %v1096_v43 }
 0x299   : > { %1078 = vst [vmem:[#allocation2 + $0x48] sm:$0xff] %v1062_v62  ;;  %v1346_v46 = vpop.f32.mrb[20].mxu1 }
 0x29a   : > { %v1347_v47 = vpop.f32.mrb[21].mxu1  ;;  %1135 = vst [vmem:[#allocation9 + $0x38] sm:$0xff] (!%p1276_p5), %v1119_v25 }
 0x29b   : > { %v1348_v48 = vadd.f32 %v1347_v47, %v1346_v46  ;;  %v1097_v61 = vld [vmem:[#allocation2 + $0x40] sm:$0xff] (!%p1276_p5) }
 0x29c   : > { %v1120_v31 = vadd.f32 (!%p1276_p5), %v1277_v8, %v1097_v61 }
 0x29d   : > { %v1063_v49 = vadd.f32 %v1348_v48, %v870_v24  ;;  %v1349_v38 = vpop.f32.mrb[22].mxu1 }
 0x29e   : > { %v1350_v52 = vpop.f32.mrb[23].mxu1  ;;  %1136 = vst [vmem:[#allocation9 + $0x40] sm:$0xff] (!%p1276_p5), %v1120_v31 }
 0x29f   : > { %1079 = vst [vmem:[#allocation2 + $0x50] sm:$0xff] %v1063_v49  ;;  %v1351_v54 = vadd.f32 %v1350_v52, %v1349_v38 }
 0x2a0   : > { %v1098_v28 = vld [vmem:[#allocation2 + $0x48] sm:$0xff] (!%p1276_p5) }
 0x2a1   : > { %v1064_v58 = vadd.f32 %v1351_v54, %v871_v53  ;;  %v1352_v63 = vpop.f32.mrb[24].mxu1  ;;  %v1121_v4 = vadd.f32 (!%p1276_p5), %v1277_v8, %v1098_v28 }
 0x2a2   : > { %v1353_v51 = vpop.f32.mrb[25].mxu1 }
 0x2a3   : > { %1080 = vst [vmem:[#allocation2 + $0x58] sm:$0xff] %v1064_v58  ;;  %v1354_v0 = vadd.f32 %v1353_v51, %v1352_v63  ;;  %1137 = vst [vmem:[#allocation9 + $0x48] sm:$0xff] (!%p1276_p5), %v1121_v4 }
 0x2a5   : > { %v1065_v18 = vadd.f32 %v1354_v0, %v872_v26  ;;  %v1355_v59 = vpop.f32.mrb[26].mxu1 }
 0x2a6   : > { %v1356_v14 = vpop.f32.mrb[27].mxu1  ;;  %v1099_v30 = vld [vmem:[#allocation2 + $0x50] sm:$0xff] (!%p1276_p5) }
 0x2a7   : > { %1081 = vst [vmem:[#allocation2 + $0x60] sm:$0xff] %v1065_v18  ;;  %v1357_v39 = vadd.f32 %v1356_v14, %v1355_v59  ;;  %v1122_v32 = vadd.f32 (!%p1276_p5), %v1277_v8, %v1099_v30 }
 0x2a9   : > { %v1066_v7 = vadd.f32 %v1357_v39, %v873_v16  ;;  %v1358_v2 = vpop.f32.mrb[28].mxu1  ;;  %1138 = vst [vmem:[#allocation9 + $0x50] sm:$0xff] (!%p1276_p5), %v1122_v32 }
 0x2aa   : > { %v1359_v44 = vpop.f32.mrb[29].mxu1  ;;  %v1100_v33 = vld [vmem:[#allocation2 + $0x58] sm:$0xff] (!%p1276_p5) }
 0x2ab   : > { %1082 = vst [vmem:[#allocation2 + $0x68] sm:$0xff] %v1066_v7  ;;  %v1360_v10 = vadd.f32 %v1359_v44, %v1358_v2  ;;  %v1123_v40 = vadd.f32 (!%p1276_p5), %v1277_v8, %v1100_v33 }
 0x2ad   : > { %v1067_v6 = vadd.f32 %v1360_v10, %v874_v9  ;;  %v1361_v11 = vpop.f32.mrb[30].mxu1  ;;  %1088 = sbr.rel (%p1276_p5) target bundleno = 702 (0x2be), region = 60  ;;  %1139 = vst [vmem:[#allocation9 + $0x58] sm:$0xff] (!%p1276_p5), %v1123_v40 }
 0x2ae   : > { %v1362_v15 = vpop.f32.mrb[31].mxu1  ;;  %v1101_v60 = vld [vmem:[#allocation2 + $0x60] sm:$0xff] (!%p1276_p5) }
 0x2af   : > { %1083 = vst [vmem:[#allocation2 + $0x70] sm:$0xff] %v1067_v6  ;;  %v1363_v5 = vadd.f32 %v1362_v15, %v1361_v11  ;;  %v1124_v41 = vadd.f32 (!%p1276_p5), %v1277_v8, %v1101_v60 }
 0x2b1   : > { %v1068_v17 = vadd.f32 %v1363_v5, %v875_v13  ;;  %1140 = vst [vmem:[#allocation9 + $0x60] sm:$0xff] (!%p1276_p5), %v1124_v41 }
 0x2b2   : > { %v1102_v34 = vld [vmem:[#allocation2 + $0x68] sm:$0xff] (!%p1276_p5) }
 0x2b3   : > { %1084 = vst [vmem:[#allocation2 + $0x78] sm:$0xff] %v1068_v17  ;;  %v1125_v42 = vadd.f32 (!%p1276_p5), %v1277_v8, %v1102_v34 }
 0x2b5   : > { %1141 = vst [vmem:[#allocation9 + $0x68] sm:$0xff] %v1125_v42 }
 0x2b6   : > { %v1103_v22 = vld [vmem:[#allocation2 + $0x70] sm:$0xff] }
 0x2b7   : > { %v1126_v45 = vadd.f32 %v1277_v8, %v1103_v22 }
 0x2b9   : > { %1142 = vst [vmem:[#allocation9 + $0x70] sm:$0xff] %v1126_v45 }
 0x2ba   : > { %v1104_v50 = vld [vmem:[#allocation2 + $0x78] sm:$0xff] }
 0x2bb   : > { %v1127_v57 = vadd.f32 %v1277_v8, %v1104_v50 }
 0x2bd   : > { %1143 = vst [vmem:[#allocation9 + $0x78] sm:$0xff] %v1127_v57 }
 0x2be PF: > { %p1454_p1 = scmp.eq.s32.totalorder %s1885_s15, 1  ;;  %s1763_s21 = smov [#allocation9]  }
 0x2bf   : > { %s1153_s12 = sshll.u32 %s1763_s21, 4  ;;  %s1154_s12 = int_to_ptr.vmem [resolvable:$true] %s1153_s12 }
 0x2c0   : > { %s1667_s25 = scalar_lea.vmem %s1154_s12, 2048  ;;  %p1674_p2 = scmp.lt.s32.totalorder %s1154_s12, %s1154_s12 }
 0x2c1   : > { %p1668_p4 = scmp.ne.s32.totalorder %s1154_s12, %s1667_s25  ;;  %p1675_p7 = scmp.lt.s32.totalorder %s1667_s25, %s1667_s25 }
 0x2c3   : > { %p1669_p8 = pnand %p1668_p4, %p1454_p1  ;;  %p1676_p9 = por %p1675_p7, %p1674_p2 }
 0x2c5   : > { %p1670_p13 = pneg %p1669_p8 }
 0x2c7   : > { %p1677_p3 = pnand %p1676_p9, %p1670_p13 }
 0x2c9   : > { %1680 = shalt.err (!%p1677_p3)
}
 0x2ca   : > { %s1681_s10 = scalar_lea.hbm %s2389_s5, 2048 }
 0x2cb   : > { %p1682_p11 = scmp.ne.s32.totalorder %s2389_s5, %s1681_s10  ;;  %p1687_p6 = scmp.lt.u32.totalorder %s1681_s10, %s2389_s5 }
 0x2cd   : > { %p1683_p12 = pnand %p1682_p11, %p1454_p1 }
 0x2cf   : > { %p1684_p10 = pneg %p1683_p12 }
 0x2d1   : > { %p1689_p0 = pnand %p1687_p6, %p1684_p10 }
 0x2d3   : > { %1692 = shalt.err (!%p1689_p0)
}
 0x2d4   : > { %s1764_s13 = smov 128   ;;  %s1765_s17 = smov 8  }
 0x2d5   : > { %1437 = dma.vmem_to_hbm [thread:$0]  (%p1454_p1), %s1154_s12, 2048, %s2389_s5, [#allocation5], %s1764_s13, %s1764_s13, %s1765_s17  }
 0x2d6   : > { %1726 = dma.done.wait (%p1454_p1), [#allocation5], 2048  }
 0x2d7   : > { %1728 = vsyncadd (%p1454_p1), [#allocation5], 4294965248 }
 0x2d8 PF: > { %s20_s23 = sadd.s32 1, %s1751_s23   ;;  %s2409_s18 = smov %s1735_s19 }
 0x2d9   : > { %p17_p5 = scmp.ge.s32.totalorder %s20_s23, 4   ;;  %s2410_s19 = smov %s1739_s20 }
 0x2da   : > { %s2411_s20 = smov %s1840_s30  ;;  %s2412_s21 = smov %s1747_s22 }
 0x2db   : > { %s2413_s22 = smov %s2415_s24  ;;  %19 = sbr.rel (!%p17_p5) target bundleno = 8 (0x8), region = 106 }
 0x2e2   :  { %1169 = vsyncpa [#allocation4], 1 }
 0x2e3   :  { %1171 = vsyncpa [#allocation4 + $0x1], 1 }
 0x2e4   :  { %1172 = vsyncpa [#allocation7], 1 }
 0x2e5   :  { %1174 = vsyncpa [#allocation7 + $0x1], 1 }
 0x2e6   :  { %1175 = vsyncpa [#allocation5], 1 }
 0x2e7   :  { %1177 = vsyncpa [#allocation5 + $0x1], 1 }

</bundles_post_ra>
